<compile_context>
chip_gen: v5e
topology: v5e:2x2
jax: 0.10.0
libtpu: 0.0.40
codegen_flags: <defaults>
</compile_context>

<pallas_src>
import math

import jax
import jax.numpy as jnp
from jax.experimental import pallas as pl
from jax.experimental.pallas import tpu as pltpu

# ----------------------------- config ---------------------------------------
VOCAB = 100
MAX_POS = 32          # position embedding table (RoBERTa offsets by padding_idx+1)
PAD_IDX = 1
HIDDEN = 32
NUM_HEADS = 4
HEAD_DIM = HIDDEN // NUM_HEADS
FFN = 64
NUM_LAYERS = 2
NUM_CLASSES = 3
CLS_PAD = 128         # lane-dense classifier output width (first NUM_CLASSES are real)
LN_EPS = 1e-5

BATCH = 2
SEQ = 8
TOKENS = BATCH * SEQ


# ----------------------------- fused Pallas kernel ---------------------------
def _nli_fused_kernel(emb_ref, mask_ref, emb_ln_g_ref, emb_ln_b_ref,
                      wqkv_ref, bqkv_ref, wo_ref, bo_ref,
                      ln1_g_ref, ln1_b_ref,
                      w1_ref, b1_ref, w2_ref, b2_ref,
                      ln2_g_ref, ln2_b_ref,
                      cls_w_ref, cls_b_ref,
                      out_ref, ctx_ref):
    """Whole encoder + classifier in one kernel invocation (no grid)."""

    def layernorm(v, g, b):
        mean = jnp.mean(v, axis=-1, keepdims=True)
        c = v - mean
        var = jnp.mean(c * c, axis=-1, keepdims=True)
        return c * jax.lax.rsqrt(var + LN_EPS) * g + b

    def gelu(y):
        # TODO(synk): HF 'gelu' is erf-based; using the tanh approximation for a
        # Mosaic-safe EUP lowering (numerically very close).
        return 0.5 * y * (1.0 + jnp.tanh(
            0.7978845608028654 * (y + 0.044715 * y * y * y)))

    # HF extended attention mask: (1 - mask) * large_negative on the key axis.
    neg_mask = (1.0 - mask_ref[...]) * (-1e9)                        # (B, S)

    # Embeddings (already gathered+summed in the wrapper) -> LayerNorm.
    h = layernorm(emb_ref[...], emb_ln_g_ref[...], emb_ln_b_ref[...])   # (T, H)

    scale = 1.0 / math.sqrt(HEAD_DIM)
    for li in range(NUM_LAYERS):
        # ---- fused QKV projection: (T, H) @ (H, 3H) -> (T, 3H) ----
        qkv = jnp.dot(h, wqkv_ref[li],
                      preferred_element_type=jnp.float32) + bqkv_ref[li]

        # ---- multi-head attention: heads = contiguous lane slices -----------
        for b in range(BATCH):
            r0 = b * SEQ
            m_b = neg_mask[b:b + 1, :]                               # (1, S)
            for hd in range(NUM_HEADS):
                c0 = hd * HEAD_DIM
                q = qkv[r0:r0 + SEQ, c0:c0 + HEAD_DIM]                           # (S, Dh)
                k = qkv[r0:r0 + SEQ, HIDDEN + c0:HIDDEN + c0 + HEAD_DIM]         # (S, Dh)
                v = qkv[r0:r0 + SEQ, 2 * HIDDEN + c0:2 * HIDDEN + c0 + HEAD_DIM]  # (S, Dh)
                s = jnp.dot(q, k.T, preferred_element_type=jnp.float32) * scale + m_b
                mx = jnp.max(s, axis=-1, keepdims=True)
                p = jnp.exp(s - mx)
                p = p * pl.reciprocal(jnp.sum(p, axis=-1, keepdims=True), approx=True)
                ctx_ref[r0:r0 + SEQ, c0:c0 + HEAD_DIM] = jnp.dot(
                    p, v, preferred_element_type=jnp.float32)

        # ---- output projection + Add&LN --------------------------------------
        attn = jnp.dot(ctx_ref[...], wo_ref[li],
                       preferred_element_type=jnp.float32) + bo_ref[li]
        h = layernorm(attn + h, ln1_g_ref[li], ln1_b_ref[li])

        # ---- FFN (GELU) + Add&LN ----------------------------------------------
        ff = gelu(jnp.dot(h, w1_ref[li],
                          preferred_element_type=jnp.float32) + b1_ref[li])
        ff = jnp.dot(ff, w2_ref[li],
                     preferred_element_type=jnp.float32) + b2_ref[li]
        h = layernorm(ff + h, ln2_g_ref[li], ln2_b_ref[li])

    # ---- classifier epilogue: lane-dense (T, 128) store; real logits are the
    #      first NUM_CLASSES columns, CLS rows are selected in the wrapper.
    out_ref[...] = jnp.dot(h, cls_w_ref[...],
                           preferred_element_type=jnp.float32) + cls_b_ref[...]


# ----------------------------- model ----------------------------------------
def init_params(key):
    std = 0.02
    keys = jax.random.split(key, 4 + NUM_LAYERS)

    def dense(k, shape):
        return (std * jax.random.normal(k, shape)).astype(jnp.float32)

    cls_w = dense(keys[3], (HIDDEN, NUM_CLASSES))
    cls_w_pad = jnp.zeros((HIDDEN, CLS_PAD), jnp.float32).at[:, :NUM_CLASSES].set(cls_w)
    cls_b_pad = jnp.zeros((1, CLS_PAD), jnp.float32)

    params = {
        "word_emb": dense(keys[0], (VOCAB, HIDDEN)),
        "pos_emb": dense(keys[1], (MAX_POS, HIDDEN)),
        "type_emb": dense(keys[2], (1, HIDDEN)),
        "emb_ln_g": jnp.ones((1, HIDDEN), jnp.float32),
        "emb_ln_b": jnp.zeros((1, HIDDEN), jnp.float32),
        "cls_w": cls_w_pad,
        "cls_b": cls_b_pad,
    }

    wqkv, bqkv, wo, bo = [], [], [], []
    ln1g, ln1b, w1, b1, w2, b2, ln2g, ln2b = [], [], [], [], [], [], [], []
    for li in range(NUM_LAYERS):
        lk = jax.random.split(keys[4 + li], 6)
        wq = dense(lk[0], (HIDDEN, HIDDEN))
        wk = dense(lk[1], (HIDDEN, HIDDEN))
        wv = dense(lk[2], (HIDDEN, HIDDEN))
        wqkv.append(jnp.concatenate([wq, wk, wv], axis=1))          # (H, 3H)
        bqkv.append(jnp.zeros((1, 3 * HIDDEN), jnp.float32))
        wo.append(dense(lk[3], (HIDDEN, HIDDEN)))
        bo.append(jnp.zeros((1, HIDDEN), jnp.float32))
        ln1g.append(jnp.ones((1, HIDDEN), jnp.float32))
        ln1b.append(jnp.zeros((1, HIDDEN), jnp.float32))
        w1.append(dense(lk[4], (HIDDEN, FFN)))
        b1.append(jnp.zeros((1, FFN), jnp.float32))
        w2.append(dense(lk[5], (FFN, HIDDEN)))
        b2.append(jnp.zeros((1, HIDDEN), jnp.float32))
        ln2g.append(jnp.ones((1, HIDDEN), jnp.float32))
        ln2b.append(jnp.zeros((1, HIDDEN), jnp.float32))

    params.update({
        "wqkv": jnp.stack(wqkv), "bqkv": jnp.stack(bqkv),
        "wo": jnp.stack(wo), "bo": jnp.stack(bo),
        "attn_ln_g": jnp.stack(ln1g), "attn_ln_b": jnp.stack(ln1b),
        "w1": jnp.stack(w1), "b1": jnp.stack(b1),
        "w2": jnp.stack(w2), "b2": jnp.stack(b2),
        "ffn_ln_g": jnp.stack(ln2g), "ffn_ln_b": jnp.stack(ln2b),
    })
    return params


def nli_forward(params, input_ids, attention_mask):
    B, S = input_ids.shape

    # --- embeddings: gathers stay in XLA (table lookups are glue) ---
    not_pad = (input_ids != PAD_IDX).astype(jnp.int32)
    position_ids = jnp.cumsum(not_pad, axis=1) * not_pad + PAD_IDX   # RoBERTa scheme
    emb = (jnp.take(params["word_emb"], input_ids, axis=0)
           + jnp.take(params["pos_emb"], position_ids, axis=0)
           + params["type_emb"][0])                                   # (B, S, H)
    emb = emb.reshape(B * S, HIDDEN).astype(jnp.float32)
    mask = attention_mask.astype(jnp.float32)                         # (B, S)

    # --- single fused kernel: all weights VMEM-resident, no grid ---
    out = pl.pallas_call(
        _nli_fused_kernel,
        out_shape=jax.ShapeDtypeStruct((B * S, CLS_PAD), jnp.float32),
        scratch_shapes=[pltpu.VMEM((B * S, HIDDEN), jnp.float32)],    # ctx buffer
    )(emb, mask,
      params["emb_ln_g"], params["emb_ln_b"],
      params["wqkv"], params["bqkv"], params["wo"], params["bo"],
      params["attn_ln_g"], params["attn_ln_b"],
      params["w1"], params["b1"], params["w2"], params["b2"],
      params["ffn_ln_g"], params["ffn_ln_b"],
      params["cls_w"], params["cls_b"])

    # CLS-token logits, un-padded to 3 classes.
    return out.reshape(B, S, CLS_PAD)[:, 0, :NUM_CLASSES]


# ----------------------------- main ------------------------------------------
if __name__ == "__main__":
    key = jax.random.PRNGKey(0)
    k_ids, k_params = jax.random.split(key)

    input_ids = jax.random.randint(k_ids, (BATCH, SEQ), 2, VOCAB, dtype=jnp.int32)
    input_ids = input_ids.at[:, 0].set(0)                 # <s> token
    input_ids = input_ids.at[1, SEQ - 2:].set(PAD_IDX)    # some padding in sample 1
    attention_mask = (input_ids != PAD_IDX).astype(jnp.int32)

    params = init_params(k_params)

    logits = jax.jit(nli_forward)(params, input_ids, attention_mask)
    logits = jax.block_until_ready(logits)
    assert logits.shape == (BATCH, NUM_CLASSES)
    assert logits.dtype == jnp.float32
    print("KERNEL_OK")
</pallas_src>

<mosaic_0001>
module attributes {stable_mosaic.version = 11 : i64} {
  func.func @_nli_fused_kernel(%arg0: memref<16x32xf32, #tpu.memory_space<vmem>>, %arg1: memref<2x8xf32, #tpu.memory_space<vmem>>, %arg2: memref<1x32xf32, #tpu.memory_space<vmem>>, %arg3: memref<1x32xf32, #tpu.memory_space<vmem>>, %arg4: memref<2x32x96xf32, #tpu.memory_space<vmem>>, %arg5: memref<2x1x96xf32, #tpu.memory_space<vmem>>, %arg6: memref<2x32x32xf32, #tpu.memory_space<vmem>>, %arg7: memref<2x1x32xf32, #tpu.memory_space<vmem>>, %arg8: memref<2x1x32xf32, #tpu.memory_space<vmem>>, %arg9: memref<2x1x32xf32, #tpu.memory_space<vmem>>, %arg10: memref<2x32x64xf32, #tpu.memory_space<vmem>>, %arg11: memref<2x1x64xf32, #tpu.memory_space<vmem>>, %arg12: memref<2x64x32xf32, #tpu.memory_space<vmem>>, %arg13: memref<2x1x32xf32, #tpu.memory_space<vmem>>, %arg14: memref<2x1x32xf32, #tpu.memory_space<vmem>>, %arg15: memref<2x1x32xf32, #tpu.memory_space<vmem>>, %arg16: memref<32x128xf32, #tpu.memory_space<vmem>>, %arg17: memref<1x128xf32, #tpu.memory_space<vmem>>, %arg18: memref<16x128xf32, #tpu.memory_space<vmem>>, %arg19: memref<16x32xf32, #tpu.memory_space<vmem>>) attributes {dimension_semantics = [], scalar_prefetch = 0 : i64, scratch_operands = 1 : i64, tpu.core_type = #tpu.core_type<tc>} {
    %c0 = arith.constant 0 : index
    %c0_0 = arith.constant 0 : index
    %0 = vector.load %arg1[%c0, %c0_0] : memref<2x8xf32, #tpu.memory_space<vmem>>, vector<2x8xf32>
    %cst = arith.constant 1.000000e+00 : f32
    %1 = vector.broadcast %cst : f32 to vector<2x8xf32>
    %2 = arith.subf %1, %0 : vector<2x8xf32>
    %cst_1 = arith.constant -1.000000e+09 : f32
    %3 = vector.broadcast %cst_1 : f32 to vector<2x8xf32>
    %4 = arith.mulf %2, %3 : vector<2x8xf32>
    %c0_2 = arith.constant 0 : index
    %c0_3 = arith.constant 0 : index
    %5 = vector.load %arg0[%c0_2, %c0_3] : memref<16x32xf32, #tpu.memory_space<vmem>>, vector<16x32xf32>
    %c0_4 = arith.constant 0 : index
    %c0_5 = arith.constant 0 : index
    %6 = vector.load %arg2[%c0_4, %c0_5] : memref<1x32xf32, #tpu.memory_space<vmem>>, vector<1x32xf32>
    %c0_6 = arith.constant 0 : index
    %c0_7 = arith.constant 0 : index
    %7 = vector.load %arg3[%c0_6, %c0_7] : memref<1x32xf32, #tpu.memory_space<vmem>>, vector<1x32xf32>
    %cst_8 = arith.constant dense<0.000000e+00> : vector<16xf32>
    %8 = vector.multi_reduction <add>, %5, %cst_8 [1] : vector<16x32xf32> to vector<16xf32>
    %9 = vector.shape_cast %8 : vector<16xf32> to vector<16x1xf32>
    %cst_9 = arith.constant 3.200000e+01 : f32
    %10 = vector.broadcast %cst_9 : f32 to vector<16x1xf32>
    %11 = arith.divf %9, %10 : vector<16x1xf32>
    %12 = vector.broadcast %11 : vector<16x1xf32> to vector<16x32xf32>
    %13 = arith.subf %5, %12 : vector<16x32xf32>
    %14 = arith.mulf %13, %13 : vector<16x32xf32>
    %cst_10 = arith.constant dense<0.000000e+00> : vector<16xf32>
    %15 = vector.multi_reduction <add>, %14, %cst_10 [1] : vector<16x32xf32> to vector<16xf32>
    %16 = vector.shape_cast %15 : vector<16xf32> to vector<16x1xf32>
    %cst_11 = arith.constant 3.200000e+01 : f32
    %17 = vector.broadcast %cst_11 : f32 to vector<16x1xf32>
    %18 = arith.divf %16, %17 : vector<16x1xf32>
    %cst_12 = arith.constant 9.99999974E-6 : f32
    %19 = vector.broadcast %cst_12 : f32 to vector<16x1xf32>
    %20 = arith.addf %18, %19 : vector<16x1xf32>
    %21 = math.rsqrt %20 : vector<16x1xf32>
    %22 = vector.broadcast %21 : vector<16x1xf32> to vector<16x32xf32>
    %23 = arith.mulf %13, %22 : vector<16x32xf32>
    %24 = vector.broadcast %6 : vector<1x32xf32> to vector<16x32xf32>
    %25 = arith.mulf %23, %24 : vector<16x32xf32>
    %26 = vector.broadcast %7 : vector<1x32xf32> to vector<16x32xf32>
    %27 = arith.addf %25, %26 : vector<16x32xf32>
    %c0_13 = arith.constant 0 : index
    %c0_14 = arith.constant 0 : index
    %c0_15 = arith.constant 0 : index
    %28 = vector.load %arg4[%c0_13, %c0_14, %c0_15] : memref<2x32x96xf32, #tpu.memory_space<vmem>>, vector<1x32x96xf32>
    %29 = vector.shape_cast %28 : vector<1x32x96xf32> to vector<32x96xf32>
    %cst_16 = arith.constant dense<0.000000e+00> : vector<16x96xf32>
    %30 = tpu.matmul %27, %29, %cst_16 {dimension_numbers = #tpu.dot_dimension_numbers<[1], [0], [0], [1], [0, 0, 1, 1], [], []>} : vector<16x32xf32>, vector<32x96xf32>, vector<16x96xf32> -> vector<16x96xf32>
    %c0_17 = arith.constant 0 : index
    %c0_18 = arith.constant 0 : index
    %c0_19 = arith.constant 0 : index
    %31 = vector.load %arg5[%c0_17, %c0_18, %c0_19] : memref<2x1x96xf32, #tpu.memory_space<vmem>>, vector<1x1x96xf32>
    %32 = vector.shape_cast %31 : vector<1x1x96xf32> to vector<1x96xf32>
    %33 = vector.broadcast %32 : vector<1x96xf32> to vector<16x96xf32>
    %34 = arith.addf %30, %33 : vector<16x96xf32>
    %35 = vector.extract_strided_slice %4 {offsets = [0, 0], sizes = [1, 8], strides = [1, 1]} : vector<2x8xf32> to vector<1x8xf32>
    %36 = vector.extract_strided_slice %34 {offsets = [0, 0], sizes = [8, 8], strides = [1, 1]} : vector<16x96xf32> to vector<8x8xf32>
    %37 = vector.extract_strided_slice %34 {offsets = [0, 32], sizes = [8, 8], strides = [1, 1]} : vector<16x96xf32> to vector<8x8xf32>
    %38 = vector.extract_strided_slice %34 {offsets = [0, 64], sizes = [8, 8], strides = [1, 1]} : vector<16x96xf32> to vector<8x8xf32>
    %39 = tpu.transpose %37, [1, 0] : vector<8x8xf32> -> vector<8x8xf32>
    %cst_20 = arith.constant dense<0.000000e+00> : vector<8x8xf32>
    %40 = tpu.matmul %36, %39, %cst_20 {dimension_numbers = #tpu.dot_dimension_numbers<[1], [0], [0], [1], [0, 0, 1, 1], [], []>} : vector<8x8xf32>, vector<8x8xf32>, vector<8x8xf32> -> vector<8x8xf32>
    %cst_21 = arith.constant 0.353553385 : f32
    %41 = vector.broadcast %cst_21 : f32 to vector<8x8xf32>
    %42 = arith.mulf %40, %41 : vector<8x8xf32>
    %43 = vector.broadcast %35 : vector<1x8xf32> to vector<8x8xf32>
    %44 = arith.addf %42, %43 : vector<8x8xf32>
    %cst_22 = arith.constant dense<0xFF800000> : vector<8xf32>
    %45 = vector.multi_reduction <maximumf>, %44, %cst_22 [1] : vector<8x8xf32> to vector<8xf32>
    %46 = vector.shape_cast %45 : vector<8xf32> to vector<8x1xf32>
    %47 = vector.broadcast %46 : vector<8x1xf32> to vector<8x8xf32>
    %48 = arith.subf %44, %47 : vector<8x8xf32>
    %49 = math.exp %48 : vector<8x8xf32>
    %cst_23 = arith.constant dense<0.000000e+00> : vector<8xf32>
    %50 = vector.multi_reduction <add>, %49, %cst_23 [1] : vector<8x8xf32> to vector<8xf32>
    %51 = vector.shape_cast %50 : vector<8xf32> to vector<8x1xf32>
    %52 = tpu.reciprocal %51 {approx = true} : vector<8x1xf32> -> vector<8x1xf32>
    %53 = vector.broadcast %52 : vector<8x1xf32> to vector<8x8xf32>
    %54 = arith.mulf %49, %53 : vector<8x8xf32>
    %cst_24 = arith.constant dense<0.000000e+00> : vector<8x8xf32>
    %55 = tpu.matmul %54, %38, %cst_24 {dimension_numbers = #tpu.dot_dimension_numbers<[1], [0], [0], [1], [0, 0, 1, 1], [], []>} : vector<8x8xf32>, vector<8x8xf32>, vector<8x8xf32> -> vector<8x8xf32>
    %c0_25 = arith.constant 0 : index
    %c0_26 = arith.constant 0 : index
    %56 = vector.load %arg19[%c0_25, %c0_26] : memref<16x32xf32, #tpu.memory_space<vmem>>, vector<8x8xf32>
    tpu.vector_store %arg19[%c0_25, %c0_26], %55 {strides = array<i32>} : memref<16x32xf32, #tpu.memory_space<vmem>>, vector<8x8xf32>,
    %57 = vector.extract_strided_slice %34 {offsets = [0, 8], sizes = [8, 8], strides = [1, 1]} : vector<16x96xf32> to vector<8x8xf32>
    %58 = vector.extract_strided_slice %34 {offsets = [0, 40], sizes = [8, 8], strides = [1, 1]} : vector<16x96xf32> to vector<8x8xf32>
    %59 = vector.extract_strided_slice %34 {offsets = [0, 72], sizes = [8, 8], strides = [1, 1]} : vector<16x96xf32> to vector<8x8xf32>
    %60 = tpu.transpose %58, [1, 0] : vector<8x8xf32> -> vector<8x8xf32>
    %cst_27 = arith.constant dense<0.000000e+00> : vector<8x8xf32>
    %61 = tpu.matmul %57, %60, %cst_27 {dimension_numbers = #tpu.dot_dimension_numbers<[1], [0], [0], [1], [0, 0, 1, 1], [], []>} : vector<8x8xf32>, vector<8x8xf32>, vector<8x8xf32> -> vector<8x8xf32>
    %cst_28 = arith.constant 0.353553385 : f32
    %62 = vector.broadcast %cst_28 : f32 to vector<8x8xf32>
    %63 = arith.mulf %61, %62 : vector<8x8xf32>
    %64 = vector.broadcast %35 : vector<1x8xf32> to vector<8x8xf32>
    %65 = arith.addf %63, %64 : vector<8x8xf32>
    %cst_29 = arith.constant dense<0xFF800000> : vector<8xf32>
    %66 = vector.multi_reduction <maximumf>, %65, %cst_29 [1] : vector<8x8xf32> to vector<8xf32>
    %67 = vector.shape_cast %66 : vector<8xf32> to vector<8x1xf32>
    %68 = vector.broadcast %67 : vector<8x1xf32> to vector<8x8xf32>
    %69 = arith.subf %65, %68 : vector<8x8xf32>
    %70 = math.exp %69 : vector<8x8xf32>
    %cst_30 = arith.constant dense<0.000000e+00> : vector<8xf32>
    %71 = vector.multi_reduction <add>, %70, %cst_30 [1] : vector<8x8xf32> to vector<8xf32>
    %72 = vector.shape_cast %71 : vector<8xf32> to vector<8x1xf32>
    %73 = tpu.reciprocal %72 {approx = true} : vector<8x1xf32> -> vector<8x1xf32>
    %74 = vector.broadcast %73 : vector<8x1xf32> to vector<8x8xf32>
    %75 = arith.mulf %70, %74 : vector<8x8xf32>
    %cst_31 = arith.constant dense<0.000000e+00> : vector<8x8xf32>
    %76 = tpu.matmul %75, %59, %cst_31 {dimension_numbers = #tpu.dot_dimension_numbers<[1], [0], [0], [1], [0, 0, 1, 1], [], []>} : vector<8x8xf32>, vector<8x8xf32>, vector<8x8xf32> -> vector<8x8xf32>
    %c0_32 = arith.constant 0 : index
    %c8 = arith.constant 8 : index
    %77 = vector.load %arg19[%c0_32, %c8] : memref<16x32xf32, #tpu.memory_space<vmem>>, vector<8x8xf32>
    tpu.vector_store %arg19[%c0_32, %c8], %76 {strides = array<i32>} : memref<16x32xf32, #tpu.memory_space<vmem>>, vector<8x8xf32>,
    %78 = vector.extract_strided_slice %34 {offsets = [0, 16], sizes = [8, 8], strides = [1, 1]} : vector<16x96xf32> to vector<8x8xf32>
    %79 = vector.extract_strided_slice %34 {offsets = [0, 48], sizes = [8, 8], strides = [1, 1]} : vector<16x96xf32> to vector<8x8xf32>
    %80 = vector.extract_strided_slice %34 {offsets = [0, 80], sizes = [8, 8], strides = [1, 1]} : vector<16x96xf32> to vector<8x8xf32>
    %81 = tpu.transpose %79, [1, 0] : vector<8x8xf32> -> vector<8x8xf32>
    %cst_33 = arith.constant dense<0.000000e+00> : vector<8x8xf32>
    %82 = tpu.matmul %78, %81, %cst_33 {dimension_numbers = #tpu.dot_dimension_numbers<[1], [0], [0], [1], [0, 0, 1, 1], [], []>} : vector<8x8xf32>, vector<8x8xf32>, vector<8x8xf32> -> vector<8x8xf32>
    %cst_34 = arith.constant 0.353553385 : f32
    %83 = vector.broadcast %cst_34 : f32 to vector<8x8xf32>
    %84 = arith.mulf %82, %83 : vector<8x8xf32>
    %85 = vector.broadcast %35 : vector<1x8xf32> to vector<8x8xf32>
    %86 = arith.addf %84, %85 : vector<8x8xf32>
    %cst_35 = arith.constant dense<0xFF800000> : vector<8xf32>
    %87 = vector.multi_reduction <maximumf>, %86, %cst_35 [1] : vector<8x8xf32> to vector<8xf32>
    %88 = vector.shape_cast %87 : vector<8xf32> to vector<8x1xf32>
    %89 = vector.broadcast %88 : vector<8x1xf32> to vector<8x8xf32>
    %90 = arith.subf %86, %89 : vector<8x8xf32>
    %91 = math.exp %90 : vector<8x8xf32>
    %cst_36 = arith.constant dense<0.000000e+00> : vector<8xf32>
    %92 = vector.multi_reduction <add>, %91, %cst_36 [1] : vector<8x8xf32> to vector<8xf32>
    %93 = vector.shape_cast %92 : vector<8xf32> to vector<8x1xf32>
    %94 = tpu.reciprocal %93 {approx = true} : vector<8x1xf32> -> vector<8x1xf32>
    %95 = vector.broadcast %94 : vector<8x1xf32> to vector<8x8xf32>
    %96 = arith.mulf %91, %95 : vector<8x8xf32>
    %cst_37 = arith.constant dense<0.000000e+00> : vector<8x8xf32>
    %97 = tpu.matmul %96, %80, %cst_37 {dimension_numbers = #tpu.dot_dimension_numbers<[1], [0], [0], [1], [0, 0, 1, 1], [], []>} : vector<8x8xf32>, vector<8x8xf32>, vector<8x8xf32> -> vector<8x8xf32>
    %c0_38 = arith.constant 0 : index
    %c16 = arith.constant 16 : index
    %98 = vector.load %arg19[%c0_38, %c16] : memref<16x32xf32, #tpu.memory_space<vmem>>, vector<8x8xf32>
    tpu.vector_store %arg19[%c0_38, %c16], %97 {strides = array<i32>} : memref<16x32xf32, #tpu.memory_space<vmem>>, vector<8x8xf32>,
    %99 = vector.extract_strided_slice %34 {offsets = [0, 24], sizes = [8, 8], strides = [1, 1]} : vector<16x96xf32> to vector<8x8xf32>
    %100 = vector.extract_strided_slice %34 {offsets = [0, 56], sizes = [8, 8], strides = [1, 1]} : vector<16x96xf32> to vector<8x8xf32>
    %101 = vector.extract_strided_slice %34 {offsets = [0, 88], sizes = [8, 8], strides = [1, 1]} : vector<16x96xf32> to vector<8x8xf32>
    %102 = tpu.transpose %100, [1, 0] : vector<8x8xf32> -> vector<8x8xf32>
    %cst_39 = arith.constant dense<0.000000e+00> : vector<8x8xf32>
    %103 = tpu.matmul %99, %102, %cst_39 {dimension_numbers = #tpu.dot_dimension_numbers<[1], [0], [0], [1], [0, 0, 1, 1], [], []>} : vector<8x8xf32>, vector<8x8xf32>, vector<8x8xf32> -> vector<8x8xf32>
    %cst_40 = arith.constant 0.353553385 : f32
    %104 = vector.broadcast %cst_40 : f32 to vector<8x8xf32>
    %105 = arith.mulf %103, %104 : vector<8x8xf32>
    %106 = vector.broadcast %35 : vector<1x8xf32> to vector<8x8xf32>
    %107 = arith.addf %105, %106 : vector<8x8xf32>
    %cst_41 = arith.constant dense<0xFF800000> : vector<8xf32>
    %108 = vector.multi_reduction <maximumf>, %107, %cst_41 [1] : vector<8x8xf32> to vector<8xf32>
    %109 = vector.shape_cast %108 : vector<8xf32> to vector<8x1xf32>
    %110 = vector.broadcast %109 : vector<8x1xf32> to vector<8x8xf32>
    %111 = arith.subf %107, %110 : vector<8x8xf32>
    %112 = math.exp %111 : vector<8x8xf32>
    %cst_42 = arith.constant dense<0.000000e+00> : vector<8xf32>
    %113 = vector.multi_reduction <add>, %112, %cst_42 [1] : vector<8x8xf32> to vector<8xf32>
    %114 = vector.shape_cast %113 : vector<8xf32> to vector<8x1xf32>
    %115 = tpu.reciprocal %114 {approx = true} : vector<8x1xf32> -> vector<8x1xf32>
    %116 = vector.broadcast %115 : vector<8x1xf32> to vector<8x8xf32>
    %117 = arith.mulf %112, %116 : vector<8x8xf32>
    %cst_43 = arith.constant dense<0.000000e+00> : vector<8x8xf32>
    %118 = tpu.matmul %117, %101, %cst_43 {dimension_numbers = #tpu.dot_dimension_numbers<[1], [0], [0], [1], [0, 0, 1, 1], [], []>} : vector<8x8xf32>, vector<8x8xf32>, vector<8x8xf32> -> vector<8x8xf32>
    %c0_44 = arith.constant 0 : index
    %c24 = arith.constant 24 : index
    %119 = vector.load %arg19[%c0_44, %c24] : memref<16x32xf32, #tpu.memory_space<vmem>>, vector<8x8xf32>
    tpu.vector_store %arg19[%c0_44, %c24], %118 {strides = array<i32>} : memref<16x32xf32, #tpu.memory_space<vmem>>, vector<8x8xf32>,
    %120 = vector.extract_strided_slice %4 {offsets = [1, 0], sizes = [1, 8], strides = [1, 1]} : vector<2x8xf32> to vector<1x8xf32>
    %121 = vector.extract_strided_slice %34 {offsets = [8, 0], sizes = [8, 8], strides = [1, 1]} : vector<16x96xf32> to vector<8x8xf32>
    %122 = vector.extract_strided_slice %34 {offsets = [8, 32], sizes = [8, 8], strides = [1, 1]} : vector<16x96xf32> to vector<8x8xf32>
    %123 = vector.extract_strided_slice %34 {offsets = [8, 64], sizes = [8, 8], strides = [1, 1]} : vector<16x96xf32> to vector<8x8xf32>
    %124 = tpu.transpose %122, [1, 0] : vector<8x8xf32> -> vector<8x8xf32>
    %cst_45 = arith.constant dense<0.000000e+00> : vector<8x8xf32>
    %125 = tpu.matmul %121, %124, %cst_45 {dimension_numbers = #tpu.dot_dimension_numbers<[1], [0], [0], [1], [0, 0, 1, 1], [], []>} : vector<8x8xf32>, vector<8x8xf32>, vector<8x8xf32> -> vector<8x8xf32>
    %cst_46 = arith.constant 0.353553385 : f32
    %126 = vector.broadcast %cst_46 : f32 to vector<8x8xf32>
    %127 = arith.mulf %125, %126 : vector<8x8xf32>
    %128 = vector.broadcast %120 : vector<1x8xf32> to vector<8x8xf32>
    %129 = arith.addf %127, %128 : vector<8x8xf32>
    %cst_47 = arith.constant dense<0xFF800000> : vector<8xf32>
    %130 = vector.multi_reduction <maximumf>, %129, %cst_47 [1] : vector<8x8xf32> to vector<8xf32>
    %131 = vector.shape_cast %130 : vector<8xf32> to vector<8x1xf32>
    %132 = vector.broadcast %131 : vector<8x1xf32> to vector<8x8xf32>
    %133 = arith.subf %129, %132 : vector<8x8xf32>
    %134 = math.exp %133 : vector<8x8xf32>
    %cst_48 = arith.constant dense<0.000000e+00> : vector<8xf32>
    %135 = vector.multi_reduction <add>, %134, %cst_48 [1] : vector<8x8xf32> to vector<8xf32>
    %136 = vector.shape_cast %135 : vector<8xf32> to vector<8x1xf32>
    %137 = tpu.reciprocal %136 {approx = true} : vector<8x1xf32> -> vector<8x1xf32>
    %138 = vector.broadcast %137 : vector<8x1xf32> to vector<8x8xf32>
    %139 = arith.mulf %134, %138 : vector<8x8xf32>
    %cst_49 = arith.constant dense<0.000000e+00> : vector<8x8xf32>
    %140 = tpu.matmul %139, %123, %cst_49 {dimension_numbers = #tpu.dot_dimension_numbers<[1], [0], [0], [1], [0, 0, 1, 1], [], []>} : vector<8x8xf32>, vector<8x8xf32>, vector<8x8xf32> -> vector<8x8xf32>
    %c8_50 = arith.constant 8 : index
    %c0_51 = arith.constant 0 : index
    %141 = vector.load %arg19[%c8_50, %c0_51] : memref<16x32xf32, #tpu.memory_space<vmem>>, vector<8x8xf32>
    tpu.vector_store %arg19[%c8_50, %c0_51], %140 {strides = array<i32>} : memref<16x32xf32, #tpu.memory_space<vmem>>, vector<8x8xf32>,
    %142 = vector.extract_strided_slice %34 {offsets = [8, 8], sizes = [8, 8], strides = [1, 1]} : vector<16x96xf32> to vector<8x8xf32>
    %143 = vector.extract_strided_slice %34 {offsets = [8, 40], sizes = [8, 8], strides = [1, 1]} : vector<16x96xf32> to vector<8x8xf32>
    %144 = vector.extract_strided_slice %34 {offsets = [8, 72], sizes = [8, 8], strides = [1, 1]} : vector<16x96xf32> to vector<8x8xf32>
    %145 = tpu.transpose %143, [1, 0] : vector<8x8xf32> -> vector<8x8xf32>
    %cst_52 = arith.constant dense<0.000000e+00> : vector<8x8xf32>
    %146 = tpu.matmul %142, %145, %cst_52 {dimension_numbers = #tpu.dot_dimension_numbers<[1], [0], [0], [1], [0, 0, 1, 1], [], []>} : vector<8x8xf32>, vector<8x8xf32>, vector<8x8xf32> -> vector<8x8xf32>
    %cst_53 = arith.constant 0.353553385 : f32
    %147 = vector.broadcast %cst_53 : f32 to vector<8x8xf32>
    %148 = arith.mulf %146, %147 : vector<8x8xf32>
    %149 = vector.broadcast %120 : vector<1x8xf32> to vector<8x8xf32>
    %150 = arith.addf %148, %149 : vector<8x8xf32>
    %cst_54 = arith.constant dense<0xFF800000> : vector<8xf32>
    %151 = vector.multi_reduction <maximumf>, %150, %cst_54 [1] : vector<8x8xf32> to vector<8xf32>
    %152 = vector.shape_cast %151 : vector<8xf32> to vector<8x1xf32>
    %153 = vector.broadcast %152 : vector<8x1xf32> to vector<8x8xf32>
    %154 = arith.subf %150, %153 : vector<8x8xf32>
    %155 = math.exp %154 : vector<8x8xf32>
    %cst_55 = arith.constant dense<0.000000e+00> : vector<8xf32>
    %156 = vector.multi_reduction <add>, %155, %cst_55 [1] : vector<8x8xf32> to vector<8xf32>
    %157 = vector.shape_cast %156 : vector<8xf32> to vector<8x1xf32>
    %158 = tpu.reciprocal %157 {approx = true} : vector<8x1xf32> -> vector<8x1xf32>
    %159 = vector.broadcast %158 : vector<8x1xf32> to vector<8x8xf32>
    %160 = arith.mulf %155, %159 : vector<8x8xf32>
    %cst_56 = arith.constant dense<0.000000e+00> : vector<8x8xf32>
    %161 = tpu.matmul %160, %144, %cst_56 {dimension_numbers = #tpu.dot_dimension_numbers<[1], [0], [0], [1], [0, 0, 1, 1], [], []>} : vector<8x8xf32>, vector<8x8xf32>, vector<8x8xf32> -> vector<8x8xf32>
    %c8_57 = arith.constant 8 : index
    %c8_58 = arith.constant 8 : index
    %162 = vector.load %arg19[%c8_57, %c8_58] : memref<16x32xf32, #tpu.memory_space<vmem>>, vector<8x8xf32>
    tpu.vector_store %arg19[%c8_57, %c8_58], %161 {strides = array<i32>} : memref<16x32xf32, #tpu.memory_space<vmem>>, vector<8x8xf32>,
    %163 = vector.extract_strided_slice %34 {offsets = [8, 16], sizes = [8, 8], strides = [1, 1]} : vector<16x96xf32> to vector<8x8xf32>
    %164 = vector.extract_strided_slice %34 {offsets = [8, 48], sizes = [8, 8], strides = [1, 1]} : vector<16x96xf32> to vector<8x8xf32>
    %165 = vector.extract_strided_slice %34 {offsets = [8, 80], sizes = [8, 8], strides = [1, 1]} : vector<16x96xf32> to vector<8x8xf32>
    %166 = tpu.transpose %164, [1, 0] : vector<8x8xf32> -> vector<8x8xf32>
    %cst_59 = arith.constant dense<0.000000e+00> : vector<8x8xf32>
    %167 = tpu.matmul %163, %166, %cst_59 {dimension_numbers = #tpu.dot_dimension_numbers<[1], [0], [0], [1], [0, 0, 1, 1], [], []>} : vector<8x8xf32>, vector<8x8xf32>, vector<8x8xf32> -> vector<8x8xf32>
    %cst_60 = arith.constant 0.353553385 : f32
    %168 = vector.broadcast %cst_60 : f32 to vector<8x8xf32>
    %169 = arith.mulf %167, %168 : vector<8x8xf32>
    %170 = vector.broadcast %120 : vector<1x8xf32> to vector<8x8xf32>
    %171 = arith.addf %169, %170 : vector<8x8xf32>
    %cst_61 = arith.constant dense<0xFF800000> : vector<8xf32>
    %172 = vector.multi_reduction <maximumf>, %171, %cst_61 [1] : vector<8x8xf32> to vector<8xf32>
    %173 = vector.shape_cast %172 : vector<8xf32> to vector<8x1xf32>
    %174 = vector.broadcast %173 : vector<8x1xf32> to vector<8x8xf32>
    %175 = arith.subf %171, %174 : vector<8x8xf32>
    %176 = math.exp %175 : vector<8x8xf32>
    %cst_62 = arith.constant dense<0.000000e+00> : vector<8xf32>
    %177 = vector.multi_reduction <add>, %176, %cst_62 [1] : vector<8x8xf32> to vector<8xf32>
    %178 = vector.shape_cast %177 : vector<8xf32> to vector<8x1xf32>
    %179 = tpu.reciprocal %178 {approx = true} : vector<8x1xf32> -> vector<8x1xf32>
    %180 = vector.broadcast %179 : vector<8x1xf32> to vector<8x8xf32>
    %181 = arith.mulf %176, %180 : vector<8x8xf32>
    %cst_63 = arith.constant dense<0.000000e+00> : vector<8x8xf32>
    %182 = tpu.matmul %181, %165, %cst_63 {dimension_numbers = #tpu.dot_dimension_numbers<[1], [0], [0], [1], [0, 0, 1, 1], [], []>} : vector<8x8xf32>, vector<8x8xf32>, vector<8x8xf32> -> vector<8x8xf32>
    %c8_64 = arith.constant 8 : index
    %c16_65 = arith.constant 16 : index
    %183 = vector.load %arg19[%c8_64, %c16_65] : memref<16x32xf32, #tpu.memory_space<vmem>>, vector<8x8xf32>
    tpu.vector_store %arg19[%c8_64, %c16_65], %182 {strides = array<i32>} : memref<16x32xf32, #tpu.memory_space<vmem>>, vector<8x8xf32>,
    %184 = vector.extract_strided_slice %34 {offsets = [8, 24], sizes = [8, 8], strides = [1, 1]} : vector<16x96xf32> to vector<8x8xf32>
    %185 = vector.extract_strided_slice %34 {offsets = [8, 56], sizes = [8, 8], strides = [1, 1]} : vector<16x96xf32> to vector<8x8xf32>
    %186 = vector.extract_strided_slice %34 {offsets = [8, 88], sizes = [8, 8], strides = [1, 1]} : vector<16x96xf32> to vector<8x8xf32>
    %187 = tpu.transpose %185, [1, 0] : vector<8x8xf32> -> vector<8x8xf32>
    %cst_66 = arith.constant dense<0.000000e+00> : vector<8x8xf32>
    %188 = tpu.matmul %184, %187, %cst_66 {dimension_numbers = #tpu.dot_dimension_numbers<[1], [0], [0], [1], [0, 0, 1, 1], [], []>} : vector<8x8xf32>, vector<8x8xf32>, vector<8x8xf32> -> vector<8x8xf32>
    %cst_67 = arith.constant 0.353553385 : f32
    %189 = vector.broadcast %cst_67 : f32 to vector<8x8xf32>
    %190 = arith.mulf %188, %189 : vector<8x8xf32>
    %191 = vector.broadcast %120 : vector<1x8xf32> to vector<8x8xf32>
    %192 = arith.addf %190, %191 : vector<8x8xf32>
    %cst_68 = arith.constant dense<0xFF800000> : vector<8xf32>
    %193 = vector.multi_reduction <maximumf>, %192, %cst_68 [1] : vector<8x8xf32> to vector<8xf32>
    %194 = vector.shape_cast %193 : vector<8xf32> to vector<8x1xf32>
    %195 = vector.broadcast %194 : vector<8x1xf32> to vector<8x8xf32>
    %196 = arith.subf %192, %195 : vector<8x8xf32>
    %197 = math.exp %196 : vector<8x8xf32>
    %cst_69 = arith.constant dense<0.000000e+00> : vector<8xf32>
    %198 = vector.multi_reduction <add>, %197, %cst_69 [1] : vector<8x8xf32> to vector<8xf32>
    %199 = vector.shape_cast %198 : vector<8xf32> to vector<8x1xf32>
    %200 = tpu.reciprocal %199 {approx = true} : vector<8x1xf32> -> vector<8x1xf32>
    %201 = vector.broadcast %200 : vector<8x1xf32> to vector<8x8xf32>
    %202 = arith.mulf %197, %201 : vector<8x8xf32>
    %cst_70 = arith.constant dense<0.000000e+00> : vector<8x8xf32>
    %203 = tpu.matmul %202, %186, %cst_70 {dimension_numbers = #tpu.dot_dimension_numbers<[1], [0], [0], [1], [0, 0, 1, 1], [], []>} : vector<8x8xf32>, vector<8x8xf32>, vector<8x8xf32> -> vector<8x8xf32>
    %c8_71 = arith.constant 8 : index
    %c24_72 = arith.constant 24 : index
    %204 = vector.load %arg19[%c8_71, %c24_72] : memref<16x32xf32, #tpu.memory_space<vmem>>, vector<8x8xf32>
    tpu.vector_store %arg19[%c8_71, %c24_72], %203 {strides = array<i32>} : memref<16x32xf32, #tpu.memory_space<vmem>>, vector<8x8xf32>,
    %c0_73 = arith.constant 0 : index
    %c0_74 = arith.constant 0 : index
    %205 = vector.load %arg19[%c0_73, %c0_74] : memref<16x32xf32, #tpu.memory_space<vmem>>, vector<16x32xf32>
    %c0_75 = arith.constant 0 : index
    %c0_76 = arith.constant 0 : index
    %c0_77 = arith.constant 0 : index
    %206 = vector.load %arg6[%c0_75, %c0_76, %c0_77] : memref<2x32x32xf32, #tpu.memory_space<vmem>>, vector<1x32x32xf32>
    %207 = vector.shape_cast %206 : vector<1x32x32xf32> to vector<32x32xf32>
    %cst_78 = arith.constant dense<0.000000e+00> : vector<16x32xf32>
    %208 = tpu.matmul %205, %207, %cst_78 {dimension_numbers = #tpu.dot_dimension_numbers<[1], [0], [0], [1], [0, 0, 1, 1], [], []>} : vector<16x32xf32>, vector<32x32xf32>, vector<16x32xf32> -> vector<16x32xf32>
    %c0_79 = arith.constant 0 : index
    %c0_80 = arith.constant 0 : index
    %c0_81 = arith.constant 0 : index
    %209 = vector.load %arg7[%c0_79, %c0_80, %c0_81] : memref<2x1x32xf32, #tpu.memory_space<vmem>>, vector<1x1x32xf32>
    %210 = vector.shape_cast %209 : vector<1x1x32xf32> to vector<1x32xf32>
    %211 = vector.broadcast %210 : vector<1x32xf32> to vector<16x32xf32>
    %212 = arith.addf %208, %211 : vector<16x32xf32>
    %213 = arith.addf %212, %27 : vector<16x32xf32>
    %c0_82 = arith.constant 0 : index
    %c0_83 = arith.constant 0 : index
    %c0_84 = arith.constant 0 : index
    %214 = vector.load %arg8[%c0_82, %c0_83, %c0_84] : memref<2x1x32xf32, #tpu.memory_space<vmem>>, vector<1x1x32xf32>
    %215 = vector.shape_cast %214 : vector<1x1x32xf32> to vector<1x32xf32>
    %c0_85 = arith.constant 0 : index
    %c0_86 = arith.constant 0 : index
    %c0_87 = arith.constant 0 : index
    %216 = vector.load %arg9[%c0_85, %c0_86, %c0_87] : memref<2x1x32xf32, #tpu.memory_space<vmem>>, vector<1x1x32xf32>
    %217 = vector.shape_cast %216 : vector<1x1x32xf32> to vector<1x32xf32>
    %cst_88 = arith.constant dense<0.000000e+00> : vector<16xf32>
    %218 = vector.multi_reduction <add>, %213, %cst_88 [1] : vector<16x32xf32> to vector<16xf32>
    %219 = vector.shape_cast %218 : vector<16xf32> to vector<16x1xf32>
    %cst_89 = arith.constant 3.200000e+01 : f32
    %220 = vector.broadcast %cst_89 : f32 to vector<16x1xf32>
    %221 = arith.divf %219, %220 : vector<16x1xf32>
    %222 = vector.broadcast %221 : vector<16x1xf32> to vector<16x32xf32>
    %223 = arith.subf %213, %222 : vector<16x32xf32>
    %224 = arith.mulf %223, %223 : vector<16x32xf32>
    %cst_90 = arith.constant dense<0.000000e+00> : vector<16xf32>
    %225 = vector.multi_reduction <add>, %224, %cst_90 [1] : vector<16x32xf32> to vector<16xf32>
    %226 = vector.shape_cast %225 : vector<16xf32> to vector<16x1xf32>
    %cst_91 = arith.constant 3.200000e+01 : f32
    %227 = vector.broadcast %cst_91 : f32 to vector<16x1xf32>
    %228 = arith.divf %226, %227 : vector<16x1xf32>
    %cst_92 = arith.constant 9.99999974E-6 : f32
    %229 = vector.broadcast %cst_92 : f32 to vector<16x1xf32>
    %230 = arith.addf %228, %229 : vector<16x1xf32>
    %231 = math.rsqrt %230 : vector<16x1xf32>
    %232 = vector.broadcast %231 : vector<16x1xf32> to vector<16x32xf32>
    %233 = arith.mulf %223, %232 : vector<16x32xf32>
    %234 = vector.broadcast %215 : vector<1x32xf32> to vector<16x32xf32>
    %235 = arith.mulf %233, %234 : vector<16x32xf32>
    %236 = vector.broadcast %217 : vector<1x32xf32> to vector<16x32xf32>
    %237 = arith.addf %235, %236 : vector<16x32xf32>
    %c0_93 = arith.constant 0 : index
    %c0_94 = arith.constant 0 : index
    %c0_95 = arith.constant 0 : index
    %238 = vector.load %arg10[%c0_93, %c0_94, %c0_95] : memref<2x32x64xf32, #tpu.memory_space<vmem>>, vector<1x32x64xf32>
    %239 = vector.shape_cast %238 : vector<1x32x64xf32> to vector<32x64xf32>
    %cst_96 = arith.constant dense<0.000000e+00> : vector<16x64xf32>
    %240 = tpu.matmul %237, %239, %cst_96 {dimension_numbers = #tpu.dot_dimension_numbers<[1], [0], [0], [1], [0, 0, 1, 1], [], []>} : vector<16x32xf32>, vector<32x64xf32>, vector<16x64xf32> -> vector<16x64xf32>
    %c0_97 = arith.constant 0 : index
    %c0_98 = arith.constant 0 : index
    %c0_99 = arith.constant 0 : index
    %241 = vector.load %arg11[%c0_97, %c0_98, %c0_99] : memref<2x1x64xf32, #tpu.memory_space<vmem>>, vector<1x1x64xf32>
    %242 = vector.shape_cast %241 : vector<1x1x64xf32> to vector<1x64xf32>
    %243 = vector.broadcast %242 : vector<1x64xf32> to vector<16x64xf32>
    %244 = arith.addf %240, %243 : vector<16x64xf32>
    %cst_100 = arith.constant 5.000000e-01 : f32
    %245 = vector.broadcast %cst_100 : f32 to vector<16x64xf32>
    %246 = arith.mulf %245, %244 : vector<16x64xf32>
    %cst_101 = arith.constant 4.471500e-02 : f32
    %247 = vector.broadcast %cst_101 : f32 to vector<16x64xf32>
    %248 = arith.mulf %247, %244 : vector<16x64xf32>
    %249 = arith.mulf %248, %244 : vector<16x64xf32>
    %250 = arith.mulf %249, %244 : vector<16x64xf32>
    %251 = arith.addf %244, %250 : vector<16x64xf32>
    %cst_102 = arith.constant 0.797884583 : f32
    %252 = vector.broadcast %cst_102 : f32 to vector<16x64xf32>
    %253 = arith.mulf %252, %251 : vector<16x64xf32>
    %254 = math.tanh %253 : vector<16x64xf32>
    %cst_103 = arith.constant 1.000000e+00 : f32
    %255 = vector.broadcast %cst_103 : f32 to vector<16x64xf32>
    %256 = arith.addf %255, %254 : vector<16x64xf32>
    %257 = arith.mulf %246, %256 : vector<16x64xf32>
    %c0_104 = arith.constant 0 : index
    %c0_105 = arith.constant 0 : index
    %c0_106 = arith.constant 0 : index
    %258 = vector.load %arg12[%c0_104, %c0_105, %c0_106] : memref<2x64x32xf32, #tpu.memory_space<vmem>>, vector<1x64x32xf32>
    %259 = vector.shape_cast %258 : vector<1x64x32xf32> to vector<64x32xf32>
    %cst_107 = arith.constant dense<0.000000e+00> : vector<16x32xf32>
    %260 = tpu.matmul %257, %259, %cst_107 {dimension_numbers = #tpu.dot_dimension_numbers<[1], [0], [0], [1], [0, 0, 1, 1], [], []>} : vector<16x64xf32>, vector<64x32xf32>, vector<16x32xf32> -> vector<16x32xf32>
    %c0_108 = arith.constant 0 : index
    %c0_109 = arith.constant 0 : index
    %c0_110 = arith.constant 0 : index
    %261 = vector.load %arg13[%c0_108, %c0_109, %c0_110] : memref<2x1x32xf32, #tpu.memory_space<vmem>>, vector<1x1x32xf32>
    %262 = vector.shape_cast %261 : vector<1x1x32xf32> to vector<1x32xf32>
    %263 = vector.broadcast %262 : vector<1x32xf32> to vector<16x32xf32>
    %264 = arith.addf %260, %263 : vector<16x32xf32>
    %265 = arith.addf %264, %237 : vector<16x32xf32>
    %c0_111 = arith.constant 0 : index
    %c0_112 = arith.constant 0 : index
    %c0_113 = arith.constant 0 : index
    %266 = vector.load %arg14[%c0_111, %c0_112, %c0_113] : memref<2x1x32xf32, #tpu.memory_space<vmem>>, vector<1x1x32xf32>
    %267 = vector.shape_cast %266 : vector<1x1x32xf32> to vector<1x32xf32>
    %c0_114 = arith.constant 0 : index
    %c0_115 = arith.constant 0 : index
    %c0_116 = arith.constant 0 : index
    %268 = vector.load %arg15[%c0_114, %c0_115, %c0_116] : memref<2x1x32xf32, #tpu.memory_space<vmem>>, vector<1x1x32xf32>
    %269 = vector.shape_cast %268 : vector<1x1x32xf32> to vector<1x32xf32>
    %cst_117 = arith.constant dense<0.000000e+00> : vector<16xf32>
    %270 = vector.multi_reduction <add>, %265, %cst_117 [1] : vector<16x32xf32> to vector<16xf32>
    %271 = vector.shape_cast %270 : vector<16xf32> to vector<16x1xf32>
    %cst_118 = arith.constant 3.200000e+01 : f32
    %272 = vector.broadcast %cst_118 : f32 to vector<16x1xf32>
    %273 = arith.divf %271, %272 : vector<16x1xf32>
    %274 = vector.broadcast %273 : vector<16x1xf32> to vector<16x32xf32>
    %275 = arith.subf %265, %274 : vector<16x32xf32>
    %276 = arith.mulf %275, %275 : vector<16x32xf32>
    %cst_119 = arith.constant dense<0.000000e+00> : vector<16xf32>
    %277 = vector.multi_reduction <add>, %276, %cst_119 [1] : vector<16x32xf32> to vector<16xf32>
    %278 = vector.shape_cast %277 : vector<16xf32> to vector<16x1xf32>
    %cst_120 = arith.constant 3.200000e+01 : f32
    %279 = vector.broadcast %cst_120 : f32 to vector<16x1xf32>
    %280 = arith.divf %278, %279 : vector<16x1xf32>
    %cst_121 = arith.constant 9.99999974E-6 : f32
    %281 = vector.broadcast %cst_121 : f32 to vector<16x1xf32>
    %282 = arith.addf %280, %281 : vector<16x1xf32>
    %283 = math.rsqrt %282 : vector<16x1xf32>
    %284 = vector.broadcast %283 : vector<16x1xf32> to vector<16x32xf32>
    %285 = arith.mulf %275, %284 : vector<16x32xf32>
    %286 = vector.broadcast %267 : vector<1x32xf32> to vector<16x32xf32>
    %287 = arith.mulf %285, %286 : vector<16x32xf32>
    %288 = vector.broadcast %269 : vector<1x32xf32> to vector<16x32xf32>
    %289 = arith.addf %287, %288 : vector<16x32xf32>
    %c1 = arith.constant 1 : index
    %c0_122 = arith.constant 0 : index
    %c0_123 = arith.constant 0 : index
    %290 = vector.load %arg4[%c1, %c0_122, %c0_123] : memref<2x32x96xf32, #tpu.memory_space<vmem>>, vector<1x32x96xf32>
    %291 = vector.shape_cast %290 : vector<1x32x96xf32> to vector<32x96xf32>
    %cst_124 = arith.constant dense<0.000000e+00> : vector<16x96xf32>
    %292 = tpu.matmul %289, %291, %cst_124 {dimension_numbers = #tpu.dot_dimension_numbers<[1], [0], [0], [1], [0, 0, 1, 1], [], []>} : vector<16x32xf32>, vector<32x96xf32>, vector<16x96xf32> -> vector<16x96xf32>
    %c1_125 = arith.constant 1 : index
    %c0_126 = arith.constant 0 : index
    %c0_127 = arith.constant 0 : index
    %293 = vector.load %arg5[%c1_125, %c0_126, %c0_127] : memref<2x1x96xf32, #tpu.memory_space<vmem>>, vector<1x1x96xf32>
    %294 = vector.shape_cast %293 : vector<1x1x96xf32> to vector<1x96xf32>
    %295 = vector.broadcast %294 : vector<1x96xf32> to vector<16x96xf32>
    %296 = arith.addf %292, %295 : vector<16x96xf32>
    %297 = vector.extract_strided_slice %4 {offsets = [0, 0], sizes = [1, 8], strides = [1, 1]} : vector<2x8xf32> to vector<1x8xf32>
    %298 = vector.extract_strided_slice %296 {offsets = [0, 0], sizes = [8, 8], strides = [1, 1]} : vector<16x96xf32> to vector<8x8xf32>
    %299 = vector.extract_strided_slice %296 {offsets = [0, 32], sizes = [8, 8], strides = [1, 1]} : vector<16x96xf32> to vector<8x8xf32>
    %300 = vector.extract_strided_slice %296 {offsets = [0, 64], sizes = [8, 8], strides = [1, 1]} : vector<16x96xf32> to vector<8x8xf32>
    %301 = tpu.transpose %299, [1, 0] : vector<8x8xf32> -> vector<8x8xf32>
    %cst_128 = arith.constant dense<0.000000e+00> : vector<8x8xf32>
    %302 = tpu.matmul %298, %301, %cst_128 {dimension_numbers = #tpu.dot_dimension_numbers<[1], [0], [0], [1], [0, 0, 1, 1], [], []>} : vector<8x8xf32>, vector<8x8xf32>, vector<8x8xf32> -> vector<8x8xf32>
    %cst_129 = arith.constant 0.353553385 : f32
    %303 = vector.broadcast %cst_129 : f32 to vector<8x8xf32>
    %304 = arith.mulf %302, %303 : vector<8x8xf32>
    %305 = vector.broadcast %297 : vector<1x8xf32> to vector<8x8xf32>
    %306 = arith.addf %304, %305 : vector<8x8xf32>
    %cst_130 = arith.constant dense<0xFF800000> : vector<8xf32>
    %307 = vector.multi_reduction <maximumf>, %306, %cst_130 [1] : vector<8x8xf32> to vector<8xf32>
    %308 = vector.shape_cast %307 : vector<8xf32> to vector<8x1xf32>
    %309 = vector.broadcast %308 : vector<8x1xf32> to vector<8x8xf32>
    %310 = arith.subf %306, %309 : vector<8x8xf32>
    %311 = math.exp %310 : vector<8x8xf32>
    %cst_131 = arith.constant dense<0.000000e+00> : vector<8xf32>
    %312 = vector.multi_reduction <add>, %311, %cst_131 [1] : vector<8x8xf32> to vector<8xf32>
    %313 = vector.shape_cast %312 : vector<8xf32> to vector<8x1xf32>
    %314 = tpu.reciprocal %313 {approx = true} : vector<8x1xf32> -> vector<8x1xf32>
    %315 = vector.broadcast %314 : vector<8x1xf32> to vector<8x8xf32>
    %316 = arith.mulf %311, %315 : vector<8x8xf32>
    %cst_132 = arith.constant dense<0.000000e+00> : vector<8x8xf32>
    %317 = tpu.matmul %316, %300, %cst_132 {dimension_numbers = #tpu.dot_dimension_numbers<[1], [0], [0], [1], [0, 0, 1, 1], [], []>} : vector<8x8xf32>, vector<8x8xf32>, vector<8x8xf32> -> vector<8x8xf32>
    %c0_133 = arith.constant 0 : index
    %c0_134 = arith.constant 0 : index
    %318 = vector.load %arg19[%c0_133, %c0_134] : memref<16x32xf32, #tpu.memory_space<vmem>>, vector<8x8xf32>
    tpu.vector_store %arg19[%c0_133, %c0_134], %317 {strides = array<i32>} : memref<16x32xf32, #tpu.memory_space<vmem>>, vector<8x8xf32>,
    %319 = vector.extract_strided_slice %296 {offsets = [0, 8], sizes = [8, 8], strides = [1, 1]} : vector<16x96xf32> to vector<8x8xf32>
    %320 = vector.extract_strided_slice %296 {offsets = [0, 40], sizes = [8, 8], strides = [1, 1]} : vector<16x96xf32> to vector<8x8xf32>
    %321 = vector.extract_strided_slice %296 {offsets = [0, 72], sizes = [8, 8], strides = [1, 1]} : vector<16x96xf32> to vector<8x8xf32>
    %322 = tpu.transpose %320, [1, 0] : vector<8x8xf32> -> vector<8x8xf32>
    %cst_135 = arith.constant dense<0.000000e+00> : vector<8x8xf32>
    %323 = tpu.matmul %319, %322, %cst_135 {dimension_numbers = #tpu.dot_dimension_numbers<[1], [0], [0], [1], [0, 0, 1, 1], [], []>} : vector<8x8xf32>, vector<8x8xf32>, vector<8x8xf32> -> vector<8x8xf32>
    %cst_136 = arith.constant 0.353553385 : f32
    %324 = vector.broadcast %cst_136 : f32 to vector<8x8xf32>
    %325 = arith.mulf %323, %324 : vector<8x8xf32>
    %326 = vector.broadcast %297 : vector<1x8xf32> to vector<8x8xf32>
    %327 = arith.addf %325, %326 : vector<8x8xf32>
    %cst_137 = arith.constant dense<0xFF800000> : vector<8xf32>
    %328 = vector.multi_reduction <maximumf>, %327, %cst_137 [1] : vector<8x8xf32> to vector<8xf32>
    %329 = vector.shape_cast %328 : vector<8xf32> to vector<8x1xf32>
    %330 = vector.broadcast %329 : vector<8x1xf32> to vector<8x8xf32>
    %331 = arith.subf %327, %330 : vector<8x8xf32>
    %332 = math.exp %331 : vector<8x8xf32>
    %cst_138 = arith.constant dense<0.000000e+00> : vector<8xf32>
    %333 = vector.multi_reduction <add>, %332, %cst_138 [1] : vector<8x8xf32> to vector<8xf32>
    %334 = vector.shape_cast %333 : vector<8xf32> to vector<8x1xf32>
    %335 = tpu.reciprocal %334 {approx = true} : vector<8x1xf32> -> vector<8x1xf32>
    %336 = vector.broadcast %335 : vector<8x1xf32> to vector<8x8xf32>
    %337 = arith.mulf %332, %336 : vector<8x8xf32>
    %cst_139 = arith.constant dense<0.000000e+00> : vector<8x8xf32>
    %338 = tpu.matmul %337, %321, %cst_139 {dimension_numbers = #tpu.dot_dimension_numbers<[1], [0], [0], [1], [0, 0, 1, 1], [], []>} : vector<8x8xf32>, vector<8x8xf32>, vector<8x8xf32> -> vector<8x8xf32>
    %c0_140 = arith.constant 0 : index
    %c8_141 = arith.constant 8 : index
    %339 = vector.load %arg19[%c0_140, %c8_141] : memref<16x32xf32, #tpu.memory_space<vmem>>, vector<8x8xf32>
    tpu.vector_store %arg19[%c0_140, %c8_141], %338 {strides = array<i32>} : memref<16x32xf32, #tpu.memory_space<vmem>>, vector<8x8xf32>,
    %340 = vector.extract_strided_slice %296 {offsets = [0, 16], sizes = [8, 8], strides = [1, 1]} : vector<16x96xf32> to vector<8x8xf32>
    %341 = vector.extract_strided_slice %296 {offsets = [0, 48], sizes = [8, 8], strides = [1, 1]} : vector<16x96xf32> to vector<8x8xf32>
    %342 = vector.extract_strided_slice %296 {offsets = [0, 80], sizes = [8, 8], strides = [1, 1]} : vector<16x96xf32> to vector<8x8xf32>
    %343 = tpu.transpose %341, [1, 0] : vector<8x8xf32> -> vector<8x8xf32>
    %cst_142 = arith.constant dense<0.000000e+00> : vector<8x8xf32>
    %344 = tpu.matmul %340, %343, %cst_142 {dimension_numbers = #tpu.dot_dimension_numbers<[1], [0], [0], [1], [0, 0, 1, 1], [], []>} : vector<8x8xf32>, vector<8x8xf32>, vector<8x8xf32> -> vector<8x8xf32>
    %cst_143 = arith.constant 0.353553385 : f32
    %345 = vector.broadcast %cst_143 : f32 to vector<8x8xf32>
    %346 = arith.mulf %344, %345 : vector<8x8xf32>
    %347 = vector.broadcast %297 : vector<1x8xf32> to vector<8x8xf32>
    %348 = arith.addf %346, %347 : vector<8x8xf32>
    %cst_144 = arith.constant dense<0xFF800000> : vector<8xf32>
    %349 = vector.multi_reduction <maximumf>, %348, %cst_144 [1] : vector<8x8xf32> to vector<8xf32>
    %350 = vector.shape_cast %349 : vector<8xf32> to vector<8x1xf32>
    %351 = vector.broadcast %350 : vector<8x1xf32> to vector<8x8xf32>
    %352 = arith.subf %348, %351 : vector<8x8xf32>
    %353 = math.exp %352 : vector<8x8xf32>
    %cst_145 = arith.constant dense<0.000000e+00> : vector<8xf32>
    %354 = vector.multi_reduction <add>, %353, %cst_145 [1] : vector<8x8xf32> to vector<8xf32>
    %355 = vector.shape_cast %354 : vector<8xf32> to vector<8x1xf32>
    %356 = tpu.reciprocal %355 {approx = true} : vector<8x1xf32> -> vector<8x1xf32>
    %357 = vector.broadcast %356 : vector<8x1xf32> to vector<8x8xf32>
    %358 = arith.mulf %353, %357 : vector<8x8xf32>
    %cst_146 = arith.constant dense<0.000000e+00> : vector<8x8xf32>
    %359 = tpu.matmul %358, %342, %cst_146 {dimension_numbers = #tpu.dot_dimension_numbers<[1], [0], [0], [1], [0, 0, 1, 1], [], []>} : vector<8x8xf32>, vector<8x8xf32>, vector<8x8xf32> -> vector<8x8xf32>
    %c0_147 = arith.constant 0 : index
    %c16_148 = arith.constant 16 : index
    %360 = vector.load %arg19[%c0_147, %c16_148] : memref<16x32xf32, #tpu.memory_space<vmem>>, vector<8x8xf32>
    tpu.vector_store %arg19[%c0_147, %c16_148], %359 {strides = array<i32>} : memref<16x32xf32, #tpu.memory_space<vmem>>, vector<8x8xf32>,
    %361 = vector.extract_strided_slice %296 {offsets = [0, 24], sizes = [8, 8], strides = [1, 1]} : vector<16x96xf32> to vector<8x8xf32>
    %362 = vector.extract_strided_slice %296 {offsets = [0, 56], sizes = [8, 8], strides = [1, 1]} : vector<16x96xf32> to vector<8x8xf32>
    %363 = vector.extract_strided_slice %296 {offsets = [0, 88], sizes = [8, 8], strides = [1, 1]} : vector<16x96xf32> to vector<8x8xf32>
    %364 = tpu.transpose %362, [1, 0] : vector<8x8xf32> -> vector<8x8xf32>
    %cst_149 = arith.constant dense<0.000000e+00> : vector<8x8xf32>
    %365 = tpu.matmul %361, %364, %cst_149 {dimension_numbers = #tpu.dot_dimension_numbers<[1], [0], [0], [1], [0, 0, 1, 1], [], []>} : vector<8x8xf32>, vector<8x8xf32>, vector<8x8xf32> -> vector<8x8xf32>
    %cst_150 = arith.constant 0.353553385 : f32
    %366 = vector.broadcast %cst_150 : f32 to vector<8x8xf32>
    %367 = arith.mulf %365, %366 : vector<8x8xf32>
    %368 = vector.broadcast %297 : vector<1x8xf32> to vector<8x8xf32>
    %369 = arith.addf %367, %368 : vector<8x8xf32>
    %cst_151 = arith.constant dense<0xFF800000> : vector<8xf32>
    %370 = vector.multi_reduction <maximumf>, %369, %cst_151 [1] : vector<8x8xf32> to vector<8xf32>
    %371 = vector.shape_cast %370 : vector<8xf32> to vector<8x1xf32>
    %372 = vector.broadcast %371 : vector<8x1xf32> to vector<8x8xf32>
    %373 = arith.subf %369, %372 : vector<8x8xf32>
    %374 = math.exp %373 : vector<8x8xf32>
    %cst_152 = arith.constant dense<0.000000e+00> : vector<8xf32>
    %375 = vector.multi_reduction <add>, %374, %cst_152 [1] : vector<8x8xf32> to vector<8xf32>
    %376 = vector.shape_cast %375 : vector<8xf32> to vector<8x1xf32>
    %377 = tpu.reciprocal %376 {approx = true} : vector<8x1xf32> -> vector<8x1xf32>
    %378 = vector.broadcast %377 : vector<8x1xf32> to vector<8x8xf32>
    %379 = arith.mulf %374, %378 : vector<8x8xf32>
    %cst_153 = arith.constant dense<0.000000e+00> : vector<8x8xf32>
    %380 = tpu.matmul %379, %363, %cst_153 {dimension_numbers = #tpu.dot_dimension_numbers<[1], [0], [0], [1], [0, 0, 1, 1], [], []>} : vector<8x8xf32>, vector<8x8xf32>, vector<8x8xf32> -> vector<8x8xf32>
    %c0_154 = arith.constant 0 : index
    %c24_155 = arith.constant 24 : index
    %381 = vector.load %arg19[%c0_154, %c24_155] : memref<16x32xf32, #tpu.memory_space<vmem>>, vector<8x8xf32>
    tpu.vector_store %arg19[%c0_154, %c24_155], %380 {strides = array<i32>} : memref<16x32xf32, #tpu.memory_space<vmem>>, vector<8x8xf32>,
    %382 = vector.extract_strided_slice %4 {offsets = [1, 0], sizes = [1, 8], strides = [1, 1]} : vector<2x8xf32> to vector<1x8xf32>
    %383 = vector.extract_strided_slice %296 {offsets = [8, 0], sizes = [8, 8], strides = [1, 1]} : vector<16x96xf32> to vector<8x8xf32>
    %384 = vector.extract_strided_slice %296 {offsets = [8, 32], sizes = [8, 8], strides = [1, 1]} : vector<16x96xf32> to vector<8x8xf32>
    %385 = vector.extract_strided_slice %296 {offsets = [8, 64], sizes = [8, 8], strides = [1, 1]} : vector<16x96xf32> to vector<8x8xf32>
    %386 = tpu.transpose %384, [1, 0] : vector<8x8xf32> -> vector<8x8xf32>
    %cst_156 = arith.constant dense<0.000000e+00> : vector<8x8xf32>
    %387 = tpu.matmul %383, %386, %cst_156 {dimension_numbers = #tpu.dot_dimension_numbers<[1], [0], [0], [1], [0, 0, 1, 1], [], []>} : vector<8x8xf32>, vector<8x8xf32>, vector<8x8xf32> -> vector<8x8xf32>
    %cst_157 = arith.constant 0.353553385 : f32
    %388 = vector.broadcast %cst_157 : f32 to vector<8x8xf32>
    %389 = arith.mulf %387, %388 : vector<8x8xf32>
    %390 = vector.broadcast %382 : vector<1x8xf32> to vector<8x8xf32>
    %391 = arith.addf %389, %390 : vector<8x8xf32>
    %cst_158 = arith.constant dense<0xFF800000> : vector<8xf32>
    %392 = vector.multi_reduction <maximumf>, %391, %cst_158 [1] : vector<8x8xf32> to vector<8xf32>
    %393 = vector.shape_cast %392 : vector<8xf32> to vector<8x1xf32>
    %394 = vector.broadcast %393 : vector<8x1xf32> to vector<8x8xf32>
    %395 = arith.subf %391, %394 : vector<8x8xf32>
    %396 = math.exp %395 : vector<8x8xf32>
    %cst_159 = arith.constant dense<0.000000e+00> : vector<8xf32>
    %397 = vector.multi_reduction <add>, %396, %cst_159 [1] : vector<8x8xf32> to vector<8xf32>
    %398 = vector.shape_cast %397 : vector<8xf32> to vector<8x1xf32>
    %399 = tpu.reciprocal %398 {approx = true} : vector<8x1xf32> -> vector<8x1xf32>
    %400 = vector.broadcast %399 : vector<8x1xf32> to vector<8x8xf32>
    %401 = arith.mulf %396, %400 : vector<8x8xf32>
    %cst_160 = arith.constant dense<0.000000e+00> : vector<8x8xf32>
    %402 = tpu.matmul %401, %385, %cst_160 {dimension_numbers = #tpu.dot_dimension_numbers<[1], [0], [0], [1], [0, 0, 1, 1], [], []>} : vector<8x8xf32>, vector<8x8xf32>, vector<8x8xf32> -> vector<8x8xf32>
    %c8_161 = arith.constant 8 : index
    %c0_162 = arith.constant 0 : index
    %403 = vector.load %arg19[%c8_161, %c0_162] : memref<16x32xf32, #tpu.memory_space<vmem>>, vector<8x8xf32>
    tpu.vector_store %arg19[%c8_161, %c0_162], %402 {strides = array<i32>} : memref<16x32xf32, #tpu.memory_space<vmem>>, vector<8x8xf32>,
    %404 = vector.extract_strided_slice %296 {offsets = [8, 8], sizes = [8, 8], strides = [1, 1]} : vector<16x96xf32> to vector<8x8xf32>
    %405 = vector.extract_strided_slice %296 {offsets = [8, 40], sizes = [8, 8], strides = [1, 1]} : vector<16x96xf32> to vector<8x8xf32>
    %406 = vector.extract_strided_slice %296 {offsets = [8, 72], sizes = [8, 8], strides = [1, 1]} : vector<16x96xf32> to vector<8x8xf32>
    %407 = tpu.transpose %405, [1, 0] : vector<8x8xf32> -> vector<8x8xf32>
    %cst_163 = arith.constant dense<0.000000e+00> : vector<8x8xf32>
    %408 = tpu.matmul %404, %407, %cst_163 {dimension_numbers = #tpu.dot_dimension_numbers<[1], [0], [0], [1], [0, 0, 1, 1], [], []>} : vector<8x8xf32>, vector<8x8xf32>, vector<8x8xf32> -> vector<8x8xf32>
    %cst_164 = arith.constant 0.353553385 : f32
    %409 = vector.broadcast %cst_164 : f32 to vector<8x8xf32>
    %410 = arith.mulf %408, %409 : vector<8x8xf32>
    %411 = vector.broadcast %382 : vector<1x8xf32> to vector<8x8xf32>
    %412 = arith.addf %410, %411 : vector<8x8xf32>
    %cst_165 = arith.constant dense<0xFF800000> : vector<8xf32>
    %413 = vector.multi_reduction <maximumf>, %412, %cst_165 [1] : vector<8x8xf32> to vector<8xf32>
    %414 = vector.shape_cast %413 : vector<8xf32> to vector<8x1xf32>
    %415 = vector.broadcast %414 : vector<8x1xf32> to vector<8x8xf32>
    %416 = arith.subf %412, %415 : vector<8x8xf32>
    %417 = math.exp %416 : vector<8x8xf32>
    %cst_166 = arith.constant dense<0.000000e+00> : vector<8xf32>
    %418 = vector.multi_reduction <add>, %417, %cst_166 [1] : vector<8x8xf32> to vector<8xf32>
    %419 = vector.shape_cast %418 : vector<8xf32> to vector<8x1xf32>
    %420 = tpu.reciprocal %419 {approx = true} : vector<8x1xf32> -> vector<8x1xf32>
    %421 = vector.broadcast %420 : vector<8x1xf32> to vector<8x8xf32>
    %422 = arith.mulf %417, %421 : vector<8x8xf32>
    %cst_167 = arith.constant dense<0.000000e+00> : vector<8x8xf32>
    %423 = tpu.matmul %422, %406, %cst_167 {dimension_numbers = #tpu.dot_dimension_numbers<[1], [0], [0], [1], [0, 0, 1, 1], [], []>} : vector<8x8xf32>, vector<8x8xf32>, vector<8x8xf32> -> vector<8x8xf32>
    %c8_168 = arith.constant 8 : index
    %c8_169 = arith.constant 8 : index
    %424 = vector.load %arg19[%c8_168, %c8_169] : memref<16x32xf32, #tpu.memory_space<vmem>>, vector<8x8xf32>
    tpu.vector_store %arg19[%c8_168, %c8_169], %423 {strides = array<i32>} : memref<16x32xf32, #tpu.memory_space<vmem>>, vector<8x8xf32>,
    %425 = vector.extract_strided_slice %296 {offsets = [8, 16], sizes = [8, 8], strides = [1, 1]} : vector<16x96xf32> to vector<8x8xf32>
    %426 = vector.extract_strided_slice %296 {offsets = [8, 48], sizes = [8, 8], strides = [1, 1]} : vector<16x96xf32> to vector<8x8xf32>
    %427 = vector.extract_strided_slice %296 {offsets = [8, 80], sizes = [8, 8], strides = [1, 1]} : vector<16x96xf32> to vector<8x8xf32>
    %428 = tpu.transpose %426, [1, 0] : vector<8x8xf32> -> vector<8x8xf32>
    %cst_170 = arith.constant dense<0.000000e+00> : vector<8x8xf32>
    %429 = tpu.matmul %425, %428, %cst_170 {dimension_numbers = #tpu.dot_dimension_numbers<[1], [0], [0], [1], [0, 0, 1, 1], [], []>} : vector<8x8xf32>, vector<8x8xf32>, vector<8x8xf32> -> vector<8x8xf32>
    %cst_171 = arith.constant 0.353553385 : f32
    %430 = vector.broadcast %cst_171 : f32 to vector<8x8xf32>
    %431 = arith.mulf %429, %430 : vector<8x8xf32>
    %432 = vector.broadcast %382 : vector<1x8xf32> to vector<8x8xf32>
    %433 = arith.addf %431, %432 : vector<8x8xf32>
    %cst_172 = arith.constant dense<0xFF800000> : vector<8xf32>
    %434 = vector.multi_reduction <maximumf>, %433, %cst_172 [1] : vector<8x8xf32> to vector<8xf32>
    %435 = vector.shape_cast %434 : vector<8xf32> to vector<8x1xf32>
    %436 = vector.broadcast %435 : vector<8x1xf32> to vector<8x8xf32>
    %437 = arith.subf %433, %436 : vector<8x8xf32>
    %438 = math.exp %437 : vector<8x8xf32>
    %cst_173 = arith.constant dense<0.000000e+00> : vector<8xf32>
    %439 = vector.multi_reduction <add>, %438, %cst_173 [1] : vector<8x8xf32> to vector<8xf32>
    %440 = vector.shape_cast %439 : vector<8xf32> to vector<8x1xf32>
    %441 = tpu.reciprocal %440 {approx = true} : vector<8x1xf32> -> vector<8x1xf32>
    %442 = vector.broadcast %441 : vector<8x1xf32> to vector<8x8xf32>
    %443 = arith.mulf %438, %442 : vector<8x8xf32>
    %cst_174 = arith.constant dense<0.000000e+00> : vector<8x8xf32>
    %444 = tpu.matmul %443, %427, %cst_174 {dimension_numbers = #tpu.dot_dimension_numbers<[1], [0], [0], [1], [0, 0, 1, 1], [], []>} : vector<8x8xf32>, vector<8x8xf32>, vector<8x8xf32> -> vector<8x8xf32>
    %c8_175 = arith.constant 8 : index
    %c16_176 = arith.constant 16 : index
    %445 = vector.load %arg19[%c8_175, %c16_176] : memref<16x32xf32, #tpu.memory_space<vmem>>, vector<8x8xf32>
    tpu.vector_store %arg19[%c8_175, %c16_176], %444 {strides = array<i32>} : memref<16x32xf32, #tpu.memory_space<vmem>>, vector<8x8xf32>,
    %446 = vector.extract_strided_slice %296 {offsets = [8, 24], sizes = [8, 8], strides = [1, 1]} : vector<16x96xf32> to vector<8x8xf32>
    %447 = vector.extract_strided_slice %296 {offsets = [8, 56], sizes = [8, 8], strides = [1, 1]} : vector<16x96xf32> to vector<8x8xf32>
    %448 = vector.extract_strided_slice %296 {offsets = [8, 88], sizes = [8, 8], strides = [1, 1]} : vector<16x96xf32> to vector<8x8xf32>
    %449 = tpu.transpose %447, [1, 0] : vector<8x8xf32> -> vector<8x8xf32>
    %cst_177 = arith.constant dense<0.000000e+00> : vector<8x8xf32>
    %450 = tpu.matmul %446, %449, %cst_177 {dimension_numbers = #tpu.dot_dimension_numbers<[1], [0], [0], [1], [0, 0, 1, 1], [], []>} : vector<8x8xf32>, vector<8x8xf32>, vector<8x8xf32> -> vector<8x8xf32>
    %cst_178 = arith.constant 0.353553385 : f32
    %451 = vector.broadcast %cst_178 : f32 to vector<8x8xf32>
    %452 = arith.mulf %450, %451 : vector<8x8xf32>
    %453 = vector.broadcast %382 : vector<1x8xf32> to vector<8x8xf32>
    %454 = arith.addf %452, %453 : vector<8x8xf32>
    %cst_179 = arith.constant dense<0xFF800000> : vector<8xf32>
    %455 = vector.multi_reduction <maximumf>, %454, %cst_179 [1] : vector<8x8xf32> to vector<8xf32>
    %456 = vector.shape_cast %455 : vector<8xf32> to vector<8x1xf32>
    %457 = vector.broadcast %456 : vector<8x1xf32> to vector<8x8xf32>
    %458 = arith.subf %454, %457 : vector<8x8xf32>
    %459 = math.exp %458 : vector<8x8xf32>
    %cst_180 = arith.constant dense<0.000000e+00> : vector<8xf32>
    %460 = vector.multi_reduction <add>, %459, %cst_180 [1] : vector<8x8xf32> to vector<8xf32>
    %461 = vector.shape_cast %460 : vector<8xf32> to vector<8x1xf32>
    %462 = tpu.reciprocal %461 {approx = true} : vector<8x1xf32> -> vector<8x1xf32>
    %463 = vector.broadcast %462 : vector<8x1xf32> to vector<8x8xf32>
    %464 = arith.mulf %459, %463 : vector<8x8xf32>
    %cst_181 = arith.constant dense<0.000000e+00> : vector<8x8xf32>
    %465 = tpu.matmul %464, %448, %cst_181 {dimension_numbers = #tpu.dot_dimension_numbers<[1], [0], [0], [1], [0, 0, 1, 1], [], []>} : vector<8x8xf32>, vector<8x8xf32>, vector<8x8xf32> -> vector<8x8xf32>
    %c8_182 = arith.constant 8 : index
    %c24_183 = arith.constant 24 : index
    %466 = vector.load %arg19[%c8_182, %c24_183] : memref<16x32xf32, #tpu.memory_space<vmem>>, vector<8x8xf32>
    tpu.vector_store %arg19[%c8_182, %c24_183], %465 {strides = array<i32>} : memref<16x32xf32, #tpu.memory_space<vmem>>, vector<8x8xf32>,
    %c0_184 = arith.constant 0 : index
    %c0_185 = arith.constant 0 : index
    %467 = vector.load %arg19[%c0_184, %c0_185] : memref<16x32xf32, #tpu.memory_space<vmem>>, vector<16x32xf32>
    %c1_186 = arith.constant 1 : index
    %c0_187 = arith.constant 0 : index
    %c0_188 = arith.constant 0 : index
    %468 = vector.load %arg6[%c1_186, %c0_187, %c0_188] : memref<2x32x32xf32, #tpu.memory_space<vmem>>, vector<1x32x32xf32>
    %469 = vector.shape_cast %468 : vector<1x32x32xf32> to vector<32x32xf32>
    %cst_189 = arith.constant dense<0.000000e+00> : vector<16x32xf32>
    %470 = tpu.matmul %467, %469, %cst_189 {dimension_numbers = #tpu.dot_dimension_numbers<[1], [0], [0], [1], [0, 0, 1, 1], [], []>} : vector<16x32xf32>, vector<32x32xf32>, vector<16x32xf32> -> vector<16x32xf32>
    %c1_190 = arith.constant 1 : index
    %c0_191 = arith.constant 0 : index
    %c0_192 = arith.constant 0 : index
    %471 = vector.load %arg7[%c1_190, %c0_191, %c0_192] : memref<2x1x32xf32, #tpu.memory_space<vmem>>, vector<1x1x32xf32>
    %472 = vector.shape_cast %471 : vector<1x1x32xf32> to vector<1x32xf32>
    %473 = vector.broadcast %472 : vector<1x32xf32> to vector<16x32xf32>
    %474 = arith.addf %470, %473 : vector<16x32xf32>
    %475 = arith.addf %474, %289 : vector<16x32xf32>
    %c1_193 = arith.constant 1 : index
    %c0_194 = arith.constant 0 : index
    %c0_195 = arith.constant 0 : index
    %476 = vector.load %arg8[%c1_193, %c0_194, %c0_195] : memref<2x1x32xf32, #tpu.memory_space<vmem>>, vector<1x1x32xf32>
    %477 = vector.shape_cast %476 : vector<1x1x32xf32> to vector<1x32xf32>
    %c1_196 = arith.constant 1 : index
    %c0_197 = arith.constant 0 : index
    %c0_198 = arith.constant 0 : index
    %478 = vector.load %arg9[%c1_196, %c0_197, %c0_198] : memref<2x1x32xf32, #tpu.memory_space<vmem>>, vector<1x1x32xf32>
    %479 = vector.shape_cast %478 : vector<1x1x32xf32> to vector<1x32xf32>
    %cst_199 = arith.constant dense<0.000000e+00> : vector<16xf32>
    %480 = vector.multi_reduction <add>, %475, %cst_199 [1] : vector<16x32xf32> to vector<16xf32>
    %481 = vector.shape_cast %480 : vector<16xf32> to vector<16x1xf32>
    %cst_200 = arith.constant 3.200000e+01 : f32
    %482 = vector.broadcast %cst_200 : f32 to vector<16x1xf32>
    %483 = arith.divf %481, %482 : vector<16x1xf32>
    %484 = vector.broadcast %483 : vector<16x1xf32> to vector<16x32xf32>
    %485 = arith.subf %475, %484 : vector<16x32xf32>
    %486 = arith.mulf %485, %485 : vector<16x32xf32>
    %cst_201 = arith.constant dense<0.000000e+00> : vector<16xf32>
    %487 = vector.multi_reduction <add>, %486, %cst_201 [1] : vector<16x32xf32> to vector<16xf32>
    %488 = vector.shape_cast %487 : vector<16xf32> to vector<16x1xf32>
    %cst_202 = arith.constant 3.200000e+01 : f32
    %489 = vector.broadcast %cst_202 : f32 to vector<16x1xf32>
    %490 = arith.divf %488, %489 : vector<16x1xf32>
    %cst_203 = arith.constant 9.99999974E-6 : f32
    %491 = vector.broadcast %cst_203 : f32 to vector<16x1xf32>
    %492 = arith.addf %490, %491 : vector<16x1xf32>
    %493 = math.rsqrt %492 : vector<16x1xf32>
    %494 = vector.broadcast %493 : vector<16x1xf32> to vector<16x32xf32>
    %495 = arith.mulf %485, %494 : vector<16x32xf32>
    %496 = vector.broadcast %477 : vector<1x32xf32> to vector<16x32xf32>
    %497 = arith.mulf %495, %496 : vector<16x32xf32>
    %498 = vector.broadcast %479 : vector<1x32xf32> to vector<16x32xf32>
    %499 = arith.addf %497, %498 : vector<16x32xf32>
    %c1_204 = arith.constant 1 : index
    %c0_205 = arith.constant 0 : index
    %c0_206 = arith.constant 0 : index
    %500 = vector.load %arg10[%c1_204, %c0_205, %c0_206] : memref<2x32x64xf32, #tpu.memory_space<vmem>>, vector<1x32x64xf32>
    %501 = vector.shape_cast %500 : vector<1x32x64xf32> to vector<32x64xf32>
    %cst_207 = arith.constant dense<0.000000e+00> : vector<16x64xf32>
    %502 = tpu.matmul %499, %501, %cst_207 {dimension_numbers = #tpu.dot_dimension_numbers<[1], [0], [0], [1], [0, 0, 1, 1], [], []>} : vector<16x32xf32>, vector<32x64xf32>, vector<16x64xf32> -> vector<16x64xf32>
    %c1_208 = arith.constant 1 : index
    %c0_209 = arith.constant 0 : index
    %c0_210 = arith.constant 0 : index
    %503 = vector.load %arg11[%c1_208, %c0_209, %c0_210] : memref<2x1x64xf32, #tpu.memory_space<vmem>>, vector<1x1x64xf32>
    %504 = vector.shape_cast %503 : vector<1x1x64xf32> to vector<1x64xf32>
    %505 = vector.broadcast %504 : vector<1x64xf32> to vector<16x64xf32>
    %506 = arith.addf %502, %505 : vector<16x64xf32>
    %cst_211 = arith.constant 5.000000e-01 : f32
    %507 = vector.broadcast %cst_211 : f32 to vector<16x64xf32>
    %508 = arith.mulf %507, %506 : vector<16x64xf32>
    %cst_212 = arith.constant 4.471500e-02 : f32
    %509 = vector.broadcast %cst_212 : f32 to vector<16x64xf32>
    %510 = arith.mulf %509, %506 : vector<16x64xf32>
    %511 = arith.mulf %510, %506 : vector<16x64xf32>
    %512 = arith.mulf %511, %506 : vector<16x64xf32>
    %513 = arith.addf %506, %512 : vector<16x64xf32>
    %cst_213 = arith.constant 0.797884583 : f32
    %514 = vector.broadcast %cst_213 : f32 to vector<16x64xf32>
    %515 = arith.mulf %514, %513 : vector<16x64xf32>
    %516 = math.tanh %515 : vector<16x64xf32>
    %cst_214 = arith.constant 1.000000e+00 : f32
    %517 = vector.broadcast %cst_214 : f32 to vector<16x64xf32>
    %518 = arith.addf %517, %516 : vector<16x64xf32>
    %519 = arith.mulf %508, %518 : vector<16x64xf32>
    %c1_215 = arith.constant 1 : index
    %c0_216 = arith.constant 0 : index
    %c0_217 = arith.constant 0 : index
    %520 = vector.load %arg12[%c1_215, %c0_216, %c0_217] : memref<2x64x32xf32, #tpu.memory_space<vmem>>, vector<1x64x32xf32>
    %521 = vector.shape_cast %520 : vector<1x64x32xf32> to vector<64x32xf32>
    %cst_218 = arith.constant dense<0.000000e+00> : vector<16x32xf32>
    %522 = tpu.matmul %519, %521, %cst_218 {dimension_numbers = #tpu.dot_dimension_numbers<[1], [0], [0], [1], [0, 0, 1, 1], [], []>} : vector<16x64xf32>, vector<64x32xf32>, vector<16x32xf32> -> vector<16x32xf32>
    %c1_219 = arith.constant 1 : index
    %c0_220 = arith.constant 0 : index
    %c0_221 = arith.constant 0 : index
    %523 = vector.load %arg13[%c1_219, %c0_220, %c0_221] : memref<2x1x32xf32, #tpu.memory_space<vmem>>, vector<1x1x32xf32>
    %524 = vector.shape_cast %523 : vector<1x1x32xf32> to vector<1x32xf32>
    %525 = vector.broadcast %524 : vector<1x32xf32> to vector<16x32xf32>
    %526 = arith.addf %522, %525 : vector<16x32xf32>
    %527 = arith.addf %526, %499 : vector<16x32xf32>
    %c1_222 = arith.constant 1 : index
    %c0_223 = arith.constant 0 : index
    %c0_224 = arith.constant 0 : index
    %528 = vector.load %arg14[%c1_222, %c0_223, %c0_224] : memref<2x1x32xf32, #tpu.memory_space<vmem>>, vector<1x1x32xf32>
    %529 = vector.shape_cast %528 : vector<1x1x32xf32> to vector<1x32xf32>
    %c1_225 = arith.constant 1 : index
    %c0_226 = arith.constant 0 : index
    %c0_227 = arith.constant 0 : index
    %530 = vector.load %arg15[%c1_225, %c0_226, %c0_227] : memref<2x1x32xf32, #tpu.memory_space<vmem>>, vector<1x1x32xf32>
    %531 = vector.shape_cast %530 : vector<1x1x32xf32> to vector<1x32xf32>
    %cst_228 = arith.constant dense<0.000000e+00> : vector<16xf32>
    %532 = vector.multi_reduction <add>, %527, %cst_228 [1] : vector<16x32xf32> to vector<16xf32>
    %533 = vector.shape_cast %532 : vector<16xf32> to vector<16x1xf32>
    %cst_229 = arith.constant 3.200000e+01 : f32
    %534 = vector.broadcast %cst_229 : f32 to vector<16x1xf32>
    %535 = arith.divf %533, %534 : vector<16x1xf32>
    %536 = vector.broadcast %535 : vector<16x1xf32> to vector<16x32xf32>
    %537 = arith.subf %527, %536 : vector<16x32xf32>
    %538 = arith.mulf %537, %537 : vector<16x32xf32>
    %cst_230 = arith.constant dense<0.000000e+00> : vector<16xf32>
    %539 = vector.multi_reduction <add>, %538, %cst_230 [1] : vector<16x32xf32> to vector<16xf32>
    %540 = vector.shape_cast %539 : vector<16xf32> to vector<16x1xf32>
    %cst_231 = arith.constant 3.200000e+01 : f32
    %541 = vector.broadcast %cst_231 : f32 to vector<16x1xf32>
    %542 = arith.divf %540, %541 : vector<16x1xf32>
    %cst_232 = arith.constant 9.99999974E-6 : f32
    %543 = vector.broadcast %cst_232 : f32 to vector<16x1xf32>
    %544 = arith.addf %542, %543 : vector<16x1xf32>
    %545 = math.rsqrt %544 : vector<16x1xf32>
    %546 = vector.broadcast %545 : vector<16x1xf32> to vector<16x32xf32>
    %547 = arith.mulf %537, %546 : vector<16x32xf32>
    %548 = vector.broadcast %529 : vector<1x32xf32> to vector<16x32xf32>
    %549 = arith.mulf %547, %548 : vector<16x32xf32>
    %550 = vector.broadcast %531 : vector<1x32xf32> to vector<16x32xf32>
    %551 = arith.addf %549, %550 : vector<16x32xf32>
    %c0_233 = arith.constant 0 : index
    %c0_234 = arith.constant 0 : index
    %552 = vector.load %arg16[%c0_233, %c0_234] : memref<32x128xf32, #tpu.memory_space<vmem>>, vector<32x128xf32>
    %cst_235 = arith.constant dense<0.000000e+00> : vector<16x128xf32>
    %553 = tpu.matmul %551, %552, %cst_235 {dimension_numbers = #tpu.dot_dimension_numbers<[1], [0], [0], [1], [0, 0, 1, 1], [], []>} : vector<16x32xf32>, vector<32x128xf32>, vector<16x128xf32> -> vector<16x128xf32>
    %c0_236 = arith.constant 0 : index
    %c0_237 = arith.constant 0 : index
    %554 = vector.load %arg17[%c0_236, %c0_237] : memref<1x128xf32, #tpu.memory_space<vmem>>, vector<1x128xf32>
    %555 = vector.broadcast %554 : vector<1x128xf32> to vector<16x128xf32>
    %556 = arith.addf %553, %555 : vector<16x128xf32>
    %c0_238 = arith.constant 0 : index
    %c0_239 = arith.constant 0 : index
    %557 = vector.load %arg18[%c0_238, %c0_239] : memref<16x128xf32, #tpu.memory_space<vmem>>, vector<16x128xf32>
    tpu.vector_store %arg18[%c0_238, %c0_239], %556 {strides = array<i32>} : memref<16x128xf32, #tpu.memory_space<vmem>>, vector<16x128xf32>,
    return
  }
}

</mosaic_0001>

<bundles_post_ra>
// kernel: nli_forward.1
= control target key start
LH: loop header
LB: loop body
LE: loop exit
PB: predicated region body
PF: predicated region fallthrough
CT: control target
= control target key end

     0   :  { %vm66_vm0 = vcmask 261120   ;;  %v2120_v4 = vmov 32.0   ;;  %s2122_s20 = smov 96   ;;  %s2806_s21 = smov 64   ;;  %vm168_vm8 = vcmask 64512   ;;  %vm305_vm9 = vcmask 130112   ;;  %s2778_s0 = inlined_call_operand.vmem [shape: f32[16,32], index: 0, kind: input, shape index: {}]   ;;  %s2779_s2 = inlined_call_operand.vmem [shape: f32[1,32], index: 2, kind: input, shape index: {}]   ;;  %s2780_s3 = inlined_call_operand.vmem [shape: f32[1,32], index: 3, kind: input, shape index: {}]   ;;  %s2781_s5 = inlined_call_operand.vmem [shape: f32[2,1,96], index: 5, kind: input, shape index: {}]   ;;  %s2782_s4 = inlined_call_operand.vmem [shape: f32[2,32,96], index: 4, kind: input, shape index: {}]   ;;  %s2783_s1 = inlined_call_operand.vmem [shape: f32[2,8], index: 1, kind: input, shape index: {}]   ;;  %s2784_s7 = inlined_call_operand.vmem [shape: f32[2,1,32], index: 7, kind: input, shape index: {}]   ;;  %s2785_s6 = inlined_call_operand.vmem [shape: f32[2,32,32], index: 6, kind: input, shape index: {}]   ;;  %s2786_s8 = inlined_call_operand.vmem [shape: f32[2,1,32], index: 8, kind: input, shape index: {}]   ;;  %s2787_s9 = inlined_call_operand.vmem [shape: f32[2,1,32], index: 9, kind: input, shape index: {}]   ;;  %s2788_s11 = inlined_call_operand.vmem [shape: f32[2,1,64], index: 11, kind: input, shape index: {}]   ;;  %s2789_s10 = inlined_call_operand.vmem [shape: f32[2,32,64], index: 10, kind: input, shape index: {}]   ;;  %s2790_s13 = inlined_call_operand.vmem [shape: f32[2,1,32], index: 13, kind: input, shape index: {}]   ;;  %s2791_s12 = inlined_call_operand.vmem [shape: f32[2,64,32], index: 12, kind: input, shape index: {}]   ;;  %s2792_s14 = inlined_call_operand.vmem [shape: f32[2,1,32], index: 14, kind: input, shape index: {}]   ;;  %s2793_s15 = inlined_call_operand.vmem [shape: f32[2,1,32], index: 15, kind: input, shape index: {}]   ;;  %s2794_s16 = inlined_call_operand.vmem [shape: f32[32,128], index: 16, kind: input, shape index: {}]   ;;  %s2795_s17 = inlined_call_operand.vmem [shape: f32[1,128], index: 17, kind: input, shape index: {}]   ;;  %s2796_s18 = inlined_call_operand.vmem [shape: f32[16,128], index: 18, kind: output, shape index: {}]  }
   0x1   :  { %2814 = sst [smem:[#allocation3_spill]] %s2778_s0  ;;  %2026 = vrcp.f32 %v2120_v4  ;;  %v131_v21 = vld [vmem:[%s2782_s4 + $0x18] sm:$0xff]  ;;  %v130_v22 = vld [vmem:[%s2782_s4 + $0x10] sm:$0xff]  ;;  %v129_v23 = vld [vmem:[%s2782_s4 + $0x8] sm:$0xff]  ;;  %s2124_s22 = smov 88   ;;  %vm378_vm10 = vcmask 195712  }
   0x2   :  { %2815 = sst [smem:[#allocation4_spill]] %s2779_s2  ;;  %154 = vmatpush.msra.mxu0 %v131_v21  ;;  %v128_v24 = vld [vmem:[%s2782_s4] sm:$0xff]  ;;  %s2800_s2 = smov 120   ;;  %vm451_vm11 = vcmask 261312   ;;  %vm901_vm15 = vcmask 523264  }
   0x3   :  { %2816 = sst [smem:[#allocation5_spill]] %s2780_s3  ;;  %v2275_v53 = vld [vmem:[%s2781_s5] ss:$0 sm:$0xff]  ;;  %s2808_s3 = smov 80  }
   0x4   :  { %s2817_s29 = sld [smem:[#allocation3_spill]]  ;;  %155 = vmatpush.msra.mxu0 %v130_v22  ;;  %s2804_s23 = smov 72   ;;  %v59_v61 = vld [vmem:[%s2783_s1] sm:$0x3] }
   0x5   :  { %s2818_s27 = sld [smem:[#allocation4_spill]]  ;;  %s2798_s24 = smov 104   ;;  %v60_v62 = vsub.f32 1.0, %v59_v61 }
   0x6   :  { %156 = vmatpush.msra.mxu0 %v129_v23  ;;  %s2819_s30 = sld [smem:[#allocation5_spill]]  ;;  %s2802_s1 = smov 112  }
   0x7   :  { %v2027_v5 = vpop.eup %2026  ;;  %s2130_s28 = smov 40   ;;  %s2810_s0 = smov 16  }
   0x8   :  { %v74_v6 = vmul.f32 32.0, %v2027_v5  ;;  %vm78_vm1 = vweird.f32 %v2027_v5  ;;  %157 = vmatpush.msra.mxu0 %v128_v24  ;;  %s2812_s19 = smov 24  }
   0xa   :  { %v62_v0 = vld [vmem:[%s2817_s29] sm:$0xff]  ;;  %v63_v1 = vld [vmem:[%s2817_s29 + $0x8] sm:$0xff]  ;;  %v75_v7 = vsub.f32 1.0, %v74_v6  ;;  %s2131_s29 = smov 48  }
   0xb   :  { %v67_v2 = vsel %vm66_vm0, %v62_v0, 0.0  ;;  %v70_v3 = vsel %vm66_vm0, %v63_v1, 0.0  ;;  %v2007_v42 = vld [vmem:[%s2818_s27] ss:$0 sm:$0xff]  ;;  %s2129_s27 = smov 56  }
   0xc   :  { %68 = vadd.xlane.f32.xlu0 %v67_v2  ;;  %71 = vadd.xlane.f32.xlu1 %v70_v3  ;;  %v76_v8 = vmul.f32 %v2027_v5, %v75_v7  ;;  %v2008_v46 = vld [vmem:[%s2819_s30] ss:$0 sm:$0xff]  ;;  %s2132_s30 = smov 8  }
   0xe   :  { %v77_v9 = vadd.f32 %v2027_v5, %v76_v8 }
  0x10   :  { %v2238_v10 = vsel %vm78_vm1, %v2027_v5, %v77_v9 }
  0x7f   :  { %v69_v11 = vpop.xlane.xlu0 %68  ;;  %v72_v12 = vpop.xlane.xlu1 %71 }
  0x80   :  { %v80_v13 = vmul.f32 %v2238_v10, %v69_v11  ;;  %v81_v14 = vmul.f32 %v2238_v10, %v72_v12 }
  0x82   :  { %v82_v15 = vsub.f32 %v62_v0, %v80_v13  ;;  %v83_v16 = vsub.f32 %v63_v1, %v81_v14  ;;  %v2303_v0 = vmul.f32 -1e+09, %v60_v62 }
  0x84   :  { %v84_v17 = vmul.f32 %v82_v15, %v82_v15  ;;  %v85_v18 = vmul.f32 %v83_v16, %v83_v16  ;;  %v2306_v1 = vperm.slane %v2303_v0, 0 }
  0x86   :  { %v86_v19 = vsel %vm66_vm0, %v84_v17, 0.0  ;;  %v89_v20 = vsel %vm66_vm0, %v85_v18, 0.0 }
  0x87   :  { %87 = vadd.xlane.f32.xlu0 %v86_v19  ;;  %90 = vadd.xlane.f32.xlu1 %v89_v20 }
  0xfa   :  { %v88_v25 = vpop.xlane.xlu0 %87  ;;  %v91_v26 = vpop.xlane.xlu1 %90 }
  0xfb   :  { %v92_v27 = vmul.f32 %v88_v25, %v2238_v10  ;;  %v93_v28 = vmul.f32 %v91_v26, %v2238_v10 }
  0xfd   :  { %v94_v29 = vadd.f32 1e-05, %v92_v27  ;;  %v95_v30 = vadd.f32 1e-05, %v93_v28 }
  0xff   :  { %2028 = vrsqrt.f32 %v94_v29  ;;  %vm112_vm2 = vweird.f32 %v95_v30  ;;  %vm102_vm5 = vweird.f32 %v94_v29 }
 0x100   :  { %2030 = vrsqrt.f32 %v95_v30 }
 0x105   :  { %v2029_v31 = vpop.eup %2028 }
 0x106   :  { %v2031_v32 = vpop.eup %2030  ;;  %v97_v33 = vmul.f32 %v2029_v31, %v94_v29  ;;  %vm103_vm4 = vweird.f32 %v2029_v31 }
 0x107   :  { %v107_v34 = vmul.f32 %v2031_v32, %v95_v30  ;;  %vm113_vm3 = vweird.f32 %v2031_v32  ;;  %vm104_vm7 = vmor %vm102_vm5, %vm103_vm4 }
 0x108   :  { %v98_v35 = vmul.f32 %v2029_v31, %v97_v33  ;;  %vm114_vm6 = vmor %vm112_vm2, %vm113_vm3 }
 0x109   :  { %v108_v36 = vmul.f32 %v2031_v32, %v107_v34 }
 0x10a   :  { %v99_v37 = vmul.f32 0.5, %v98_v35 }
 0x10b   :  { %v109_v38 = vmul.f32 0.5, %v108_v36 }
 0x10c   :  { %v100_v39 = vsub.f32 1.5, %v99_v37 }
 0x10d   :  { %v110_v40 = vsub.f32 1.5, %v109_v38 }
 0x10e   :  { %v101_v41 = vmul.f32 %v2029_v31, %v100_v39 }
 0x10f   :  { %v111_v43 = vmul.f32 %v2031_v32, %v110_v40 }
 0x110   :  { %v105_v44 = vsel %vm104_vm7, %v2029_v31, %v101_v41 }
 0x111   :  { %v116_v45 = vmul.f32 %v105_v44, %v82_v15  ;;  %v115_v47 = vsel %vm114_vm6, %v2031_v32, %v111_v43 }
 0x112   :  { %v117_v49 = vmul.f32 %v115_v47, %v83_v16 }
 0x113   :  { %v121_v48 = vmul.f32 %v2007_v42, %v116_v45 }
 0x114   :  { %v122_v51 = vmul.f32 %v2007_v42, %v117_v49 }
 0x115   :  { %v2264_v50 = vadd.f32 %v2008_v46, %v121_v48 }
 0x116   :  { %v2268_v52 = vadd.f32 %v2008_v46, %v122_v51 }
 0x117   :  { %1898 = vmatmul.msk.f32.vlgmr.msra.gmra.mxu0 %vm66_vm0, %v2264_v50 }
 0x11f   :  { %1899 = vmatmul.msk.f32.gmra.mxu0 %vm66_vm0, %v2268_v52 }
 0x194   :  { %v159_v54 = vpop.f32.mrf.mxu0 }
 0x195   :  { %v2278_v55 = vadd.f32 %v2275_v53, %v159_v54 }
 0x197   :  { %234 = vrot.lane.b32.xlu0 %v2278_v55, %s2800_s2  ;;  %166 = vrot.lane.b32.xlu2 %v2278_v55, %s2122_s20 }
 0x19c   :  { %v162_v63 = vpop.f32.mrf.mxu0 }
 0x19d   :  { %v2328_v35 = vadd.f32 %v2275_v53, %v162_v63 }
 0x19f   :  { %207 = vrot.lane.b32.xlu0 %v2278_v55, %s2806_s21  ;;  %236 = vrot.lane.b32.xlu2 %v2278_v55, %s2124_s22 }
 0x1a7   :  { %309 = vrot.lane.b32.xlu0 %v2278_v55, %s2808_s3 }
 0x1af   :  { %382 = vrot.lane.b32.xlu0 %v2278_v55, %s2804_s23 }
 0x1b7   :  { %380 = vrot.lane.b32.xlu0 %v2278_v55, %s2798_s24 }
 0x1f1   :  { %v167_v56 = vpop.permute.xlu2 %166 }
 0x1f2   :  { %1900 = vmatpush.xpose.msk.msrb.mxu0 %vm168_vm8, %v167_v56 }
 0x1f5   :  { %1901 = vmatmul.msk.f32.vlgmr.msrb.gmra.mxu0 %vm168_vm8, %v2278_v55 }
 0x1f9   :  { %v237_v57 = vpop.permute.xlu2 %236 }
 0x1fa   :  { %1903 = vmatpush.xpose.msk.msra.mxu3 %vm168_vm8, %v237_v57 }
 0x209   :  { %v235_v58 = vpop.permute.xlu0 %234 }
 0x20a   :  { %1904 = vmatmul.msk.f32.vlgmr.msra.gmra.mxu3 %vm168_vm8, %v235_v58 }
 0x211   :  { %v208_v59 = vpop.permute.xlu0 %207 }
 0x212   :  { %228 = vmatpush.msra.mxu2 %v208_v59 }
 0x219   :  { %v310_v60 = vpop.permute.xlu0 %309 }
 0x21a   :  { %1906 = vmatpush.xpose.msk.msra.mxu1 %vm168_vm8, %v310_v60 }
 0x221   :  { %v383_v31 = vpop.permute.xlu0 %382 }
 0x229   :  { %v381_v34 = vpop.permute.xlu0 %380 }
 0x272   :  { %v190_v2 = vpop.f32.mrf.mxu0 }
 0x273   :  { %v193_v3 = vmul.f32 0.35355338, %v190_v2 }
 0x275   :  { %v195_v4 = vadd.f32 %v2306_v1, %v193_v3 }
 0x277   :  { %v196_v5 = vsel %vm168_vm8, %v195_v4, -inf }
 0x278   :  { %197 = vmax.xlane.f32.xlu1 %v196_v5 }
 0x28d   :  { %v259_v6 = vpop.f32.mrf.mxu3 }
 0x28e   :  { %v262_v7 = vmul.f32 0.35355338, %v259_v6 }
 0x290   :  { %v263_v8 = vadd.f32 %v262_v7, %v2306_v1 }
 0x292   :  { %v264_v9 = vsel %vm168_vm8, %v263_v8, -inf }
 0x293   :  { %265 = vmax.xlane.f32.xlu2 %v264_v9  ;;  %v2366_v9 = vperm.slane %v2303_v0, 1 }
 0x2ab   :  { %307 = vrot.lane.b32.xlu2 %v2278_v55, %s2802_s1 }
 0x2eb   :  { %v198_v11 = vpop.xlane.xlu1 %197 }
 0x2ec   :  { %v199_v12 = vsub.f32 %v195_v4, %v198_v11 }
 0x2ee   :  { %v200_v13 = vmul.f32 1.442695, %v199_v12 }
 0x2f0   :  { %2032 = vpow2.f32 %v200_v13 }
 0x2f6   :  { %v2033_v14 = vpop.eup %2032 }
 0x2f7   :  { %v202_v15 = vsel %vm168_vm8, %v2033_v14, 0.0 }
 0x2f8   :  { %203 = vadd.xlane.f32.xlu1 %v202_v15 }
 0x306   :  { %v266_v16 = vpop.xlane.xlu2 %265 }
 0x307   :  { %v267_v17 = vsub.f32 %v263_v8, %v266_v16 }
 0x309   :  { %v268_v18 = vmul.f32 1.442695, %v267_v17 }
 0x30b   :  { %2034 = vpow2.f32 %v268_v18 }
 0x30e   :  { %v308_v19 = vpop.permute.xlu2 %307 }
 0x30f   :  { %1907 = vmatmul.msk.f32.vlgmr.msra.gmra.mxu1 %vm168_vm8, %v308_v19 }
 0x311   :  { %v2035_v20 = vpop.eup %2034 }
 0x312   :  { %v270_v21 = vsel %vm168_vm8, %v2035_v20, 0.0 }
 0x313   :  { %271 = vadd.xlane.f32.xlu1 %v270_v21 }
 0x32c   :  { %275 = vrot.lane.b32.xlu1 %v2278_v55, %s2129_s27 }
 0x36b   :  { %v204_v22 = vpop.xlane.xlu1 %203 }
 0x36c   :  { %2036 = vrcp.f32 %v204_v22 }
 0x372   :  { %v2037_v23 = vpop.eup %2036 }
 0x373   :  { %v206_v24 = vmul.f32 %v2037_v23, %v2033_v14 }
 0x375   :  { %1902 = vmatmul.msk.f32.vlgmr.msra.gmra.mxu2 %vm168_vm8, %v206_v24 }
 0x386   :  { %v272_v29 = vpop.xlane.xlu1 %271 }
 0x387   :  { %2038 = vrcp.f32 %v272_v29 }
 0x38c   :  { %v332_v25 = vpop.f32.mrf.mxu1 }
 0x38d   :  { %v335_v26 = vmul.f32 0.35355338, %v332_v25  ;;  %v2039_v30 = vpop.eup %2038 }
 0x38e   :  { %v274_v33 = vmul.f32 %v2039_v30, %v2035_v20 }
 0x38f   :  { %v336_v27 = vadd.f32 %v335_v26, %v2306_v1 }
 0x391   :  { %v337_v28 = vsel %vm168_vm8, %v336_v27, -inf }
 0x392   :  { %338 = vmax.xlane.f32.xlu1 %v337_v28 }
 0x39e   :  { %v276_v32 = vpop.permute.xlu1 %275 }
 0x39f   :  { %296 = vmatpush.msrb.mxu2 %v276_v32 }
 0x3a0   :  { %1905 = vmatmul.msk.f32.vlgmr.msrb.gmra.mxu2 %vm168_vm8, %v274_v33 }
 0x3a1   :  { %1909 = vmatpush.xpose.msk.msra.mxu2 %vm168_vm8, %v383_v31 }
 0x3a8   :  { %1910 = vmatmul.msk.f32.vlgmr.msra.gmra.mxu2 %vm168_vm8, %v381_v34 }
 0x3ab   :  { %421 = vrot.lane.b32.xlu1 %v2278_v55, %s2130_s28 }
 0x3b3   :  { %595 = vrot.lane.b32.xlu1 %v2328_v35, %s2808_s3  ;;  %s2821_s3 = smov 72  }
 0x3f8   :  { %v230_v36 = vpop.f32.mrf.mxu2 }
 0x3f9   :  { %233 = vst.msk [vmem:[#allocation2] sm:$0xff] %vm168_vm8, %v230_v36 }
 0x405   :  { %v339_v37 = vpop.xlane.xlu1 %338 }
 0x406   :  { %v340_v38 = vsub.f32 %v336_v27, %v339_v37 }
 0x408   :  { %v341_v39 = vmul.f32 1.442695, %v340_v38 }
 0x40a   :  { %2040 = vpow2.f32 %v341_v39  ;;  %v742_v39 = vld [vmem:[%s2785_s6 + $0x18] sm:$0xff] }
 0x410   :  { %v2041_v40 = vpop.eup %2040 }
 0x411   :  { %v343_v41 = vsel %vm168_vm8, %v2041_v40, 0.0 }
 0x412   :  { %344 = vadd.xlane.f32.xlu2 %v343_v41  ;;  %v740_v41 = vld [vmem:[%s2785_s6 + $0x8] sm:$0xff] }
 0x41d   :  { %v422_v42 = vpop.permute.xlu1 %421 }
 0x41e   :  { %442 = vmatpush.msrb.mxu1 %v422_v42  ;;  %v739_v42 = vld [vmem:[%s2785_s6] sm:$0xff] }
 0x423   :  { %v298_v43 = vpop.f32.mrf.mxu2 }
 0x425   :  { %v596_v60 = vpop.permute.xlu1 %595 }
 0x42a   :  { %454 = vrot.lane.b32.xlu2 %v2328_v35, %s2122_s20 }
 0x42b   :  { %v405_v44 = vpop.f32.mrf.mxu2 }
 0x42c   :  { %v408_v45 = vmul.f32 0.35355338, %v405_v44 }
 0x42e   :  { %v409_v46 = vadd.f32 %v408_v45, %v2306_v1 }
 0x430   :  { %v410_v47 = vsel %vm168_vm8, %v409_v46, -inf }
 0x431   :  { %411 = vmax.xlane.f32.xlu0 %v410_v47 }
 0x432   :  { %593 = vrot.lane.b32.xlu2 %v2328_v35, %s2802_s1 }
 0x445   :  { %348 = vrot.lane.b32.xlu0 %v2278_v55, %s2131_s29 }
 0x44d   :  { %523 = vrot.lane.b32.xlu0 %v2328_v35, %s2124_s22 }
 0x455   :  { %521 = vrot.lane.b32.xlu0 %v2328_v35, %s2800_s2 }
 0x45d   :  { %667 = vrot.lane.b32.xlu0 %v2328_v35, %s2804_s23  ;;  %s2822_s23 = smov 112  }
 0x465   :  { %302 = vrot.lane.b32.xlu0 %v298_v43, %s2132_s30 }
 0x485   :  { %v345_v53 = vpop.xlane.xlu2 %344 }
 0x48d   :  { %v455_v59 = vpop.permute.xlu2 %454 }
 0x495   :  { %v594_v63 = vpop.permute.xlu2 %593 }
 0x4a4   :  { %v412_v48 = vpop.xlane.xlu0 %411 }
 0x4a5   :  { %v413_v49 = vsub.f32 %v409_v46, %v412_v48 }
 0x4a7   :  { %v414_v51 = vmul.f32 1.442695, %v413_v49 }
 0x4a9   :  { %2042 = vpow2.f32 %v414_v51 }
 0x4aa   :  { %2044 = vrcp.f32 %v345_v53 }
 0x4af   :  { %v2043_v54 = vpop.eup %2042 }
 0x4b0   :  { %v416_v55 = vsel %vm168_vm8, %v2043_v54, 0.0  ;;  %v2045_v56 = vpop.eup %2044 }
 0x4b1   :  { %417 = vadd.xlane.f32.xlu1 %v416_v55  ;;  %v347_v58 = vmul.f32 %v2045_v56, %v2041_v40  ;;  %v741_v40 = vld [vmem:[%s2785_s6 + $0x10] sm:$0xff] }
 0x4b7   :  { %v349_v57 = vpop.permute.xlu0 %348 }
 0x4b8   :  { %369 = vmatpush.msrb.mxu3 %v349_v57 }
 0x4b9   :  { %1908 = vmatmul.msk.f32.vlgmr.msrb.gmra.mxu3 %vm168_vm8, %v347_v58 }
 0x4ba   :  { %1912 = vmatpush.xpose.msk.msra.mxu3 %vm168_vm8, %v455_v59 }
 0x4be   :  { %1918 = vmatpush.xpose.msk.msrb.mxu3 %vm168_vm8, %v596_v60 }
 0x4bf   :  { %v524_v61 = vpop.permute.xlu0 %523 }
 0x4c0   :  { %1915 = vmatpush.xpose.msk.msrb.mxu2 %vm168_vm8, %v524_v61  ;;  %v2408_v61 = vld [vmem:[%s2784_s7] ss:$0 sm:$0xff] }
 0x4c1   :  { %1913 = vmatmul.msk.f32.vlgmr.msra.gmra.mxu3 %vm168_vm8, %v2328_v35 }
 0x4c2   :  { %765 = vmatpush.msra.mxu3 %v742_v39 }
 0x4c4   :  { %766 = vmatpush.msra.mxu3 %v741_v40 }
 0x4c6   :  { %767 = vmatpush.msra.mxu3 %v740_v41  ;;  %v2443_v41 = vld [vmem:[%s2787_s9] ss:$0 sm:$0xff] }
 0x4c7   :  { %v522_v62 = vpop.permute.xlu0 %521 }
 0x4c8   :  { %1916 = vmatmul.msk.f32.vlgmr.msrb.gmra.mxu2 %vm168_vm8, %v522_v62  ;;  %768 = vmatpush.msra.mxu3 %v739_v42 }
 0x4c9   :  { %1919 = vmatmul.msk.f32.vlgmr.msrb.gmra.mxu3 %vm168_vm8, %v594_v63 }
 0x4ca   :  { %665 = vrot.lane.b32.xlu1 %v2328_v35, %s2798_s24  ;;  %s2824_s24 = smov 104  }
 0x4cf   :  { %v668_v2 = vpop.permute.xlu0 %667 }
 0x4d0   :  { %1921 = vmatpush.xpose.msk.msra.mxu2 %vm168_vm8, %v668_v2 }
 0x4d7   :  { %v303_v3 = vpop.permute.xlu0 %302 }
 0x4d8   :  { %306 = vst.msk [vmem:[#allocation2] sm:$0xff] %vm305_vm9, %v303_v3 }
 0x524   :  { %v418_v4 = vpop.xlane.xlu1 %417 }
 0x525   :  { %2046 = vrcp.f32 %v418_v4 }
 0x52b   :  { %v2047_v5 = vpop.eup %2046 }
 0x52c   :  { %v420_v6 = vmul.f32 %v2047_v5, %v2043_v54 }
 0x52e   :  { %1911 = vmatmul.msk.f32.vlgmr.msrb.gmra.mxu1 %vm168_vm8, %v420_v6 }
 0x53c   :  { %v371_v7 = vpop.f32.mrf.mxu3  ;;  %v666_v8 = vpop.permute.xlu1 %665 }
 0x53d   :  { %375 = vrot.lane.b32.xlu2 %v371_v7, %s2810_s0  ;;  %1922 = vmatmul.msk.f32.vlgmr.msra.gmra.mxu2 %vm168_vm8, %v666_v8 }
 0x544   :  { %v477_v11 = vpop.f32.mrf.mxu3 }
 0x545   :  { %v480_v12 = vmul.f32 0.35355338, %v477_v11 }
 0x547   :  { %v482_v13 = vadd.f32 %v2366_v9, %v480_v12 }
 0x549   :  { %v483_v14 = vsel %vm168_vm8, %v482_v13, -inf }
 0x54a   :  { %484 = vmax.xlane.f32.xlu0 %v483_v14 }
 0x54b   :  { %v546_v15 = vpop.f32.mrf.mxu2 }
 0x54c   :  { %v549_v16 = vmul.f32 0.35355338, %v546_v15  ;;  %v618_v29 = vpop.f32.mrf.mxu3 }
 0x54d   :  { %v621_v30 = vmul.f32 0.35355338, %v618_v29 }
 0x54e   :  { %v550_v17 = vadd.f32 %v549_v16, %v2366_v9 }
 0x54f   :  { %v622_v31 = vadd.f32 %v621_v30, %v2366_v9 }
 0x550   :  { %v551_v18 = vsel %vm168_vm8, %v550_v17, -inf }
 0x551   :  { %v623_v32 = vsel %vm168_vm8, %v622_v31, -inf }
 0x566   :  { %552 = vmax.xlane.f32.xlu2 %v551_v18 }
 0x597   :  { %v376_v19 = vpop.permute.xlu2 %375 }
 0x598   :  { %379 = vst.msk [vmem:[#allocation2] sm:$0xff] %vm378_vm10, %v376_v19 }
 0x5ab   :  { %v444_v0 = vpop.f32.mrf.mxu1 }
 0x5ac   :  { %448 = vrot.lane.b32.xlu1 %v444_v0, %s2812_s19 }
 0x5bd   :  { %v485_v20 = vpop.xlane.xlu0 %484 }
 0x5be   :  { %v486_v21 = vsub.f32 %v482_v13, %v485_v20 }
 0x5c0   :  { %v487_v22 = vmul.f32 1.442695, %v486_v21  ;;  %v690_v23 = vpop.f32.mrf.mxu2 }
 0x5c1   :  { %v693_v24 = vmul.f32 0.35355338, %v690_v23 }
 0x5c2   :  { %2048 = vpow2.f32 %v487_v22 }
 0x5c3   :  { %v694_v25 = vadd.f32 %v693_v24, %v2366_v9  ;;  %v837_v24 = vld [vmem:[%s2789_s10 + $0x18] sm:$0xff] }
 0x5c5   :  { %v695_v26 = vsel %vm168_vm8, %v694_v25, -inf }
 0x5c6   :  { %696 = vmax.xlane.f32.xlu2 %v695_v26  ;;  %v835_v26 = vld [vmem:[%s2789_s10 + $0x8] sm:$0xff] }
 0x5c8   :  { %v2049_v27 = vpop.eup %2048 }
 0x5c9   :  { %v489_v28 = vsel %vm168_vm8, %v2049_v27, 0.0 }
 0x5ca   :  { %490 = vadd.xlane.f32.xlu0 %v489_v28 }
 0x5d6   :  { %624 = vmax.xlane.f32.xlu1 %v623_v32 }
 0x5d9   :  { %v553_v33 = vpop.xlane.xlu2 %552 }
 0x5da   :  { %v554_v34 = vsub.f32 %v550_v17, %v553_v33 }
 0x5dc   :  { %v555_v36 = vmul.f32 1.442695, %v554_v34 }
 0x5de   :  { %2050 = vpow2.f32 %v555_v36  ;;  %494 = vrot.lane.b32.xlu0 %v2328_v35, %s2806_s21  ;;  %s2820_s21 = smov 80  }
 0x5e4   :  { %v2051_v37 = vpop.eup %2050 }
 0x5e5   :  { %v557_v38 = vsel %vm168_vm8, %v2051_v37, 0.0 }
 0x5e6   :  { %706 = vrot.lane.b32.xlu0 %v2328_v35, %s2130_s28  ;;  %558 = vadd.xlane.f32.xlu1 %v557_v38  ;;  %v2438_v38 = vld [vmem:[%s2786_s8] ss:$0 sm:$0xff] }
 0x61e   :  { %v449_v43 = vpop.permute.xlu1 %448 }
 0x61f   :  { %452 = vst.msk [vmem:[#allocation2] sm:$0xff] %vm451_vm11, %v449_v43 }
 0x626   :  { %v737_v44 = vld [vmem:[#allocation2] sm:$0xff] }
 0x627   :  { %1924 = vmatmul.msk.f32.vlgmr.msra.gmra.mxu3 %vm66_vm0, %v737_v44 }
 0x639   :  { %v697_v45 = vpop.xlane.xlu2 %696 }
 0x63a   :  { %v698_v46 = vsub.f32 %v694_v25, %v697_v45  ;;  %v836_v25 = vld [vmem:[%s2789_s10 + $0x10] sm:$0xff] }
 0x63c   :  { %v699_v47 = vmul.f32 1.442695, %v698_v46 }
 0x63d   :  { %v491_v49 = vpop.xlane.xlu0 %490 }
 0x63e   :  { %2052 = vpow2.f32 %v699_v47 }
 0x63f   :  { %2054 = vrcp.f32 %v491_v49  ;;  %v895_v49 = vld [vmem:[%s2791_s12 + $0x30] sm:$0xff] }
 0x644   :  { %v2053_v48 = vpop.eup %2052 }
 0x645   :  { %v701_v51 = vsel %vm168_vm8, %v2053_v48, 0.0  ;;  %v2055_v56 = vpop.eup %2054 }
 0x646   :  { %702 = vadd.xlane.f32.xlu1 %v701_v51  ;;  %v493_v57 = vmul.f32 %v2055_v56, %v2049_v27  ;;  %v834_v27 = vld [vmem:[%s2789_s10] sm:$0xff]  ;;  %v894_v51 = vld [vmem:[%s2791_s12 + $0x28] sm:$0xff] }
 0x647   :  { %v890_v56 = vld [vmem:[%s2791_s12 + $0x8] sm:$0xff] }
 0x649   :  { %v625_v53 = vpop.xlane.xlu1 %624 }
 0x64a   :  { %v626_v54 = vsub.f32 %v622_v31, %v625_v53  ;;  %v893_v53 = vld [vmem:[%s2791_s12 + $0x20] sm:$0xff] }
 0x64c   :  { %v627_v55 = vmul.f32 1.442695, %v626_v54  ;;  %v892_v54 = vld [vmem:[%s2791_s12 + $0x18] sm:$0xff] }
 0x64e   :  { %2056 = vpow2.f32 %v627_v55  ;;  %v891_v55 = vld [vmem:[%s2791_s12 + $0x10] sm:$0xff] }
 0x650   :  { %v495_v58 = vpop.permute.xlu0 %494 }
 0x651   :  { %515 = vmatpush.msra.mxu0 %v495_v58  ;;  %v2479_v58 = vld [vmem:[%s2788_s11] ss:$0 sm:$0xff] }
 0x652   :  { %1914 = vmatmul.msk.f32.vlgmr.msra.gmra.mxu0 %vm168_vm8, %v493_v57  ;;  %v889_v57 = vld [vmem:[%s2791_s12] sm:$0xff] }
 0x654   :  { %v2057_v59 = vpop.eup %2056 }
 0x655   :  { %v629_v60 = vsel %vm168_vm8, %v2057_v59, 0.0 }
 0x656   :  { %630 = vadd.xlane.f32.xlu2 %v629_v60 }
 0x659   :  { %v559_v4 = vpop.xlane.xlu1 %558 }
 0x65a   :  { %2058 = vrcp.f32 %v559_v4 }
 0x65f   :  { %634 = vrot.lane.b32.xlu1 %v2328_v35, %s2131_s29 }
 0x660   :  { %v2059_v7 = vpop.eup %2058 }
 0x661   :  { %v561_v11 = vmul.f32 %v2059_v7, %v2051_v37 }
 0x66e   :  { %562 = vrot.lane.b32.xlu2 %v2328_v35, %s2129_s27 }
 0x6aa   :  { %v770_v62 = vpop.f32.mrf.mxu3 }
 0x6ab   :  { %v771_v63 = vadd.f32 %v2408_v61, %v770_v62 }
 0x6ad   :  { %v776_v2 = vadd.f32 %v771_v63, %v2264_v50  ;;  %v707_v50 = vpop.permute.xlu0 %706 }
 0x6af   :  { %v780_v3 = vsel %vm66_vm0, %v776_v2, 0.0 }
 0x6b0   :  { %781 = vadd.xlane.f32.xlu0 %v780_v3 }
 0x6b9   :  { %v703_v5 = vpop.xlane.xlu1 %702 }
 0x6c9   :  { %v631_v6 = vpop.xlane.xlu2 %630 }
 0x6ca   :  { %2060 = vrcp.f32 %v631_v6 }
 0x6cb   :  { %2062 = vrcp.f32 %v703_v5 }
 0x6cf   :  { %v517_v35 = vpop.f32.mrf.mxu0 }
 0x6d0   :  { %v2061_v8 = vpop.eup %2060  ;;  %520 = vst.msk [vmem:[#allocation2 + $0x8] sm:$0xff] %vm168_vm8, %v517_v35 }
 0x6d1   :  { %v633_v12 = vmul.f32 %v2061_v8, %v2057_v59  ;;  %v563_v13 = vpop.permute.xlu2 %562  ;;  %v635_v14 = vpop.permute.xlu1 %634 }
 0x6d2   :  { %583 = vmatpush.msra.mxu1 %v563_v13  ;;  %655 = vmatpush.msrb.mxu0 %v635_v14  ;;  %v2063_v15 = vpop.eup %2062  ;;  %v2489_v14 = vld [vmem:[%s2790_s13] ss:$0 sm:$0xff] }
 0x6d3   :  { %1917 = vmatmul.msk.f32.vlgmr.msra.gmra.mxu1 %vm168_vm8, %v561_v11  ;;  %1920 = vmatmul.msk.f32.vlgmr.msrb.gmra.mxu0 %vm168_vm8, %v633_v12  ;;  %v705_v16 = vmul.f32 %v2063_v15, %v2053_v48  ;;  %v896_v48 = vld [vmem:[%s2791_s12 + $0x38] sm:$0xff] }
 0x6d4   :  { %727 = vmatpush.msrb.mxu1 %v707_v50  ;;  %860 = vmatpush.msra.mxu0 %v837_v24 }
 0x6d5   :  { %916 = vmatpush.msrb.mxu2 %v896_v48 }
 0x6d6   :  { %861 = vmatpush.msra.mxu0 %v836_v25 }
 0x6d7   :  { %917 = vmatpush.msrb.mxu2 %v895_v49 }
 0x6d8   :  { %862 = vmatpush.msra.mxu0 %v835_v26 }
 0x6d9   :  { %918 = vmatpush.msrb.mxu2 %v894_v51 }
 0x6da   :  { %863 = vmatpush.msra.mxu0 %v834_v27 }
 0x6db   :  { %1923 = vmatmul.msk.f32.vlgmr.msrb.gmra.mxu1 %vm168_vm8, %v705_v16  ;;  %919 = vmatpush.msrb.mxu2 %v893_v53 }
 0x6dd   :  { %920 = vmatpush.msrb.mxu2 %v892_v54  ;;  %v2517_v54 = vld [vmem:[%s2792_s14] ss:$0 sm:$0xff] }
 0x6df   :  { %921 = vmatpush.msrb.mxu2 %v891_v55 }
 0x6e1   :  { %922 = vmatpush.msrb.mxu2 %v890_v56 }
 0x6e3   :  { %923 = vmatpush.msrb.mxu2 %v889_v57  ;;  %v2522_v57 = vld [vmem:[%s2793_s15] ss:$0 sm:$0xff] }
 0x723   :  { %v782_v17 = vpop.xlane.xlu0 %781 }
 0x724   :  { %v786_v18 = vmul.f32 %v782_v17, %v2238_v10 }
 0x726   :  { %v788_v19 = vsub.f32 %v776_v2, %v786_v18 }
 0x728   :  { %v790_v0 = vmul.f32 %v788_v19, %v788_v19 }
 0x72a   :  { %v792_v20 = vsel %vm66_vm0, %v790_v0, 0.0 }
 0x72b   :  { %793 = vadd.xlane.f32.xlu2 %v792_v20 }
 0x750   :  { %v585_v21 = vpop.f32.mrf.mxu1  ;;  %v657_v22 = vpop.f32.mrf.mxu0 }
 0x751   :  { %589 = vrot.lane.b32.xlu1 %v585_v21, %s2132_s30 }
 0x758   :  { %v729_v23 = vpop.f32.mrf.mxu1 }
 0x759   :  { %661 = vrot.lane.b32.xlu1 %v657_v22, %s2810_s0  ;;  %s2825_s0 = smov 64  }
 0x761   :  { %733 = vrot.lane.b32.xlu1 %v729_v23, %s2812_s19 }
 0x79e   :  { %v794_v28 = vpop.xlane.xlu2 %793 }
 0x79f   :  { %v798_v29 = vmul.f32 %v794_v28, %v2238_v10 }
 0x7a1   :  { %v800_v30 = vadd.f32 1e-05, %v798_v29 }
 0x7a3   :  { %2064 = vrsqrt.f32 %v800_v30  ;;  %vm808_vm13 = vweird.f32 %v800_v30 }
 0x7a9   :  { %v2065_v31 = vpop.eup %2064 }
 0x7aa   :  { %v803_v32 = vmul.f32 %v2065_v31, %v800_v30  ;;  %vm809_vm12 = vweird.f32 %v2065_v31 }
 0x7ab   :  { %vm810_vm14 = vmor %vm808_vm13, %vm809_vm12 }
 0x7ac   :  { %v804_v33 = vmul.f32 %v2065_v31, %v803_v32 }
 0x7ae   :  { %v805_v34 = vmul.f32 0.5, %v804_v33 }
 0x7b0   :  { %v806_v36 = vsub.f32 1.5, %v805_v34 }
 0x7b2   :  { %v807_v37 = vmul.f32 %v2065_v31, %v806_v36 }
 0x7b4   :  { %v811_v39 = vsel %vm810_vm14, %v2065_v31, %v807_v37 }
 0x7b5   :  { %v822_v40 = vmul.f32 %v811_v39, %v788_v19 }
 0x7b7   :  { %v827_v42 = vmul.f32 %v2438_v38, %v822_v40  ;;  %v1933_v40 = vld [vmem:[%s2782_s4 + $0x38] sm:$0xff] }
 0x7b8   :  { %1017 = vmatpush.msra.mxu1 %v1933_v40 }
 0x7b9   :  { %v832_v43 = vadd.f32 %v2443_v41, %v827_v42  ;;  %v1932_v42 = vld [vmem:[%s2782_s4 + $0x30] sm:$0xff] }
 0x7ba   :  { %1018 = vmatpush.msra.mxu1 %v1932_v42 }
 0x7bb   :  { %1926 = vmatmul.msk.f32.vlgmr.msra.gmra.mxu0 %vm66_vm0, %v832_v43 }
 0x7c3   :  { %v590_v44 = vpop.permute.xlu1 %589 }
 0x7c4   :  { %592 = vst.msk [vmem:[#allocation2 + $0x8] sm:$0xff] %vm305_vm9, %v590_v44 }
 0x7cb   :  { %v662_v45 = vpop.permute.xlu1 %661 }
 0x7cc   :  { %664 = vst.msk [vmem:[#allocation2 + $0x8] sm:$0xff] %vm378_vm10, %v662_v45 }
 0x7d3   :  { %v734_v46 = vpop.permute.xlu1 %733 }
 0x7d4   :  { %736 = vst.msk [vmem:[#allocation2 + $0x8] sm:$0xff] %vm451_vm11, %v734_v46 }
 0x7db   :  { %v738_v47 = vld [vmem:[#allocation2 + $0x8] sm:$0xff] }
 0x7dc   :  { %1925 = vmatmul.msk.f32.gmra.mxu3 %vm66_vm0, %v738_v47 }
 0x838   :  { %v865_v59 = vpop.f32.mrf.mxu0 }
 0x839   :  { %v866_v60 = vadd.f32 %v2479_v58, %v865_v59 }
 0x83b   :  { %v873_v62 = vmul.f32 0.044715, %v866_v60  ;;  %v871_v6 = vmul.f32 0.5, %v866_v60 }
 0x83d   :  { %v875_v63 = vmul.f32 %v873_v62, %v866_v60 }
 0x83f   :  { %v877_v2 = vmul.f32 %v875_v63, %v866_v60 }
 0x841   :  { %v879_v3 = vadd.f32 %v877_v2, %v866_v60 }
 0x843   :  { %v881_v4 = vmul.f32 0.7978846, %v879_v3 }
 0x845   :  { %2066 = vtanh.f32 %v881_v4 }
 0x84b   :  { %v2067_v5 = vpop.eup %2066 }
 0x84c   :  { %v885_v7 = vadd.f32 1.0, %v2067_v5 }
 0x84e   :  { %v887_v35 = vmul.f32 %v885_v7, %v871_v6 }
 0x850   :  { %1928 = vmatmul.msk.f32.vlgmr.msrb.gmra.mxu2 %vm901_vm15, %v887_v35 }
 0x85f   :  { %v773_v8 = vpop.f32.mrf.mxu3 }
 0x860   :  { %v774_v11 = vadd.f32 %v2408_v61, %v773_v8 }
 0x862   :  { %v777_v12 = vadd.f32 %v774_v11, %v2268_v52 }
 0x864   :  { %v783_v13 = vsel %vm66_vm0, %v777_v12, 0.0 }
 0x865   :  { %784 = vadd.xlane.f32.xlu1 %v783_v13 }
 0x8d3   :  { %v925_v50 = vpop.f32.mrf.mxu2 }
 0x8d4   :  { %v926_v15 = vadd.f32 %v2489_v14, %v925_v50 }
 0x8d6   :  { %v931_v16 = vadd.f32 %v926_v15, %v832_v43  ;;  %v1931_v43 = vld [vmem:[%s2782_s4 + $0x28] sm:$0xff] }
 0x8d7   :  { %1019 = vmatpush.msra.mxu1 %v1931_v43 }
 0x8d8   :  { %v785_v17 = vpop.xlane.xlu1 %784  ;;  %v935_v18 = vsel %vm66_vm0, %v931_v16, 0.0 }
 0x8d9   :  { %v787_v19 = vmul.f32 %v785_v17, %v2238_v10  ;;  %936 = vadd.xlane.f32.xlu2 %v935_v18 }
 0x8db   :  { %v789_v61 = vsub.f32 %v777_v12, %v787_v19  ;;  %v2017_v12 = vld [vmem:[%s2781_s5 + $0x1] ss:$0 sm:$0xff]  ;;  %s2823_s5 = smov 120  }
 0x8dd   :  { %v791_v52 = vmul.f32 %v789_v61, %v789_v61 }
 0x8df   :  { %v795_v0 = vsel %vm66_vm0, %v791_v52, 0.0 }
 0x8e0   :  { %796 = vadd.xlane.f32.xlu0 %v795_v0 }
 0x94c   :  { %v937_v20 = vpop.xlane.xlu2 %936 }
 0x94d   :  { %v941_v21 = vmul.f32 %v937_v20, %v2238_v10 }
 0x94f   :  { %v943_v22 = vsub.f32 %v931_v16, %v941_v21 }
 0x951   :  { %v945_v23 = vmul.f32 %v943_v22, %v943_v22 }
 0x953   :  { %v797_v24 = vpop.xlane.xlu0 %796  ;;  %v947_v25 = vsel %vm66_vm0, %v945_v23, 0.0 }
 0x954   :  { %v799_v26 = vmul.f32 %v797_v24, %v2238_v10  ;;  %948 = vadd.xlane.f32.xlu0 %v947_v25 }
 0x956   :  { %v801_v27 = vadd.f32 1e-05, %v799_v26 }
 0x958   :  { %2068 = vrsqrt.f32 %v801_v27  ;;  %vm818_vm2 = vweird.f32 %v801_v27 }
 0x95e   :  { %v2069_v28 = vpop.eup %2068 }
 0x95f   :  { %v813_v29 = vmul.f32 %v2069_v28, %v801_v27  ;;  %vm819_vm1 = vweird.f32 %v2069_v28 }
 0x960   :  { %vm820_vm3 = vmor %vm818_vm2, %vm819_vm1 }
 0x961   :  { %v814_v30 = vmul.f32 %v2069_v28, %v813_v29 }
 0x963   :  { %v815_v31 = vmul.f32 0.5, %v814_v30 }
 0x965   :  { %v816_v32 = vsub.f32 1.5, %v815_v31 }
 0x967   :  { %v817_v33 = vmul.f32 %v2069_v28, %v816_v32 }
 0x969   :  { %v821_v34 = vsel %vm820_vm3, %v2069_v28, %v817_v33 }
 0x96a   :  { %v823_v36 = vmul.f32 %v821_v34, %v789_v61 }
 0x96c   :  { %v828_v37 = vmul.f32 %v2438_v38, %v823_v36  ;;  %v1930_v38 = vld [vmem:[%s2782_s4 + $0x20] sm:$0xff] }
 0x96d   :  { %1020 = vmatpush.msra.mxu1 %v1930_v38 }
 0x96e   :  { %v833_v39 = vadd.f32 %v2443_v41, %v828_v37 }
 0x970   :  { %1927 = vmatmul.msk.f32.gmra.mxu0 %vm66_vm0, %v833_v39 }
 0x9c7   :  { %v949_v41 = vpop.xlane.xlu0 %948 }
 0x9c8   :  { %v953_v44 = vmul.f32 %v949_v41, %v2238_v10 }
 0x9ca   :  { %v955_v45 = vadd.f32 1e-05, %v953_v44 }
 0x9cc   :  { %2070 = vrsqrt.f32 %v955_v45  ;;  %vm963_vm5 = vweird.f32 %v955_v45 }
 0x9d2   :  { %v2071_v46 = vpop.eup %2070 }
 0x9d3   :  { %v958_v47 = vmul.f32 %v2071_v46, %v955_v45  ;;  %vm964_vm4 = vweird.f32 %v2071_v46 }
 0x9d4   :  { %vm965_vm6 = vmor %vm963_vm5, %vm964_vm4 }
 0x9d5   :  { %v959_v48 = vmul.f32 %v2071_v46, %v958_v47 }
 0x9d7   :  { %v960_v49 = vmul.f32 0.5, %v959_v48 }
 0x9d9   :  { %v961_v51 = vsub.f32 1.5, %v960_v49 }
 0x9db   :  { %v962_v53 = vmul.f32 %v2071_v46, %v961_v51 }
 0x9dd   :  { %v966_v55 = vsel %vm965_vm6, %v2071_v46, %v962_v53 }
 0x9de   :  { %v977_v56 = vmul.f32 %v966_v55, %v943_v22 }
 0x9e0   :  { %v982_v59 = vmul.f32 %v2517_v54, %v977_v56 }
 0x9e2   :  { %v2526_v60 = vadd.f32 %v2522_v57, %v982_v59 }
 0x9e4   :  { %1935 = vmatmul.msk.f32.vlgmr.msra.gmra.mxu1 %vm66_vm0, %v2526_v60 }
 0x9ed   :  { %v868_v62 = vpop.f32.mrf.mxu0 }
 0x9ee   :  { %v869_v63 = vadd.f32 %v2479_v58, %v868_v62 }
 0x9f0   :  { %v874_v2 = vmul.f32 0.044715, %v869_v63  ;;  %v872_v35 = vmul.f32 0.5, %v869_v63 }
 0x9f2   :  { %v876_v3 = vmul.f32 %v874_v2, %v869_v63 }
 0x9f4   :  { %v878_v4 = vmul.f32 %v876_v3, %v869_v63 }
 0x9f6   :  { %v880_v5 = vadd.f32 %v878_v4, %v869_v63 }
 0x9f8   :  { %v882_v6 = vmul.f32 0.7978846, %v880_v5 }
 0x9fa   :  { %2072 = vtanh.f32 %v882_v6 }
 0xa00   :  { %v2073_v7 = vpop.eup %2072 }
 0xa01   :  { %v886_v8 = vadd.f32 1.0, %v2073_v7 }
 0xa03   :  { %v888_v11 = vmul.f32 %v886_v8, %v872_v35 }
 0xa05   :  { %1929 = vmatmul.msk.f32.gmra.mxu2 %vm901_vm15, %v888_v11 }
 0xa61   :  { %v1022_v13 = vpop.f32.mrf.mxu1 }
 0xa62   :  { %v2535_v50 = vadd.f32 %v2017_v12, %v1022_v13 }
 0xa64   :  { %1029 = vrot.lane.b32.xlu2 %v2535_v50, %s2122_s20 }
 0xa6c   :  { %1097 = vrot.lane.b32.xlu2 %v2535_v50, %s2124_s22 }
 0xa74   :  { %1169 = vrot.lane.b32.xlu2 %v2535_v50, %s2820_s21 }
 0xa7c   :  { %1241 = vrot.lane.b32.xlu2 %v2535_v50, %s2821_s3 }
 0xa84   :  { %1167 = vrot.lane.b32.xlu2 %v2535_v50, %s2822_s23 }
 0xa88   :  { %v928_v58 = vpop.f32.mrf.mxu2 }
 0xa89   :  { %v929_v15 = vadd.f32 %v2489_v14, %v928_v58 }
 0xa8b   :  { %v932_v16 = vadd.f32 %v929_v15, %v833_v39 }
 0xa8d   :  { %v938_v17 = vsel %vm66_vm0, %v932_v16, 0.0 }
 0xa8e   :  { %939 = vadd.xlane.f32.xlu0 %v938_v17 }
 0xabe   :  { %v1030_v18 = vpop.permute.xlu2 %1029 }
 0xabf   :  { %1937 = vmatpush.xpose.msk.msrb.mxu3 %vm168_vm8, %v1030_v18 }
 0xac2   :  { %1938 = vmatmul.msk.f32.vlgmr.msrb.gmra.mxu3 %vm168_vm8, %v2535_v50 }
 0xac6   :  { %v1098_v19 = vpop.permute.xlu2 %1097 }
 0xac7   :  { %1940 = vmatpush.xpose.msk.msrb.mxu1 %vm168_vm8, %v1098_v19 }
 0xace   :  { %v1170_v61 = vpop.permute.xlu2 %1169 }
 0xad6   :  { %v1242_v52 = vpop.permute.xlu2 %1241 }
 0xad7   :  { %1946 = vmatpush.xpose.msk.msra.mxu1 %vm168_vm8, %v1242_v52 }
 0xade   :  { %v1168_v2 = vpop.permute.xlu2 %1167 }
 0xb01   :  { %v940_v0 = vpop.xlane.xlu0 %939 }
 0xb02   :  { %v942_v14 = vmul.f32 %v940_v0, %v2238_v10 }
 0xb04   :  { %v944_v20 = vsub.f32 %v932_v16, %v942_v14 }
 0xb06   :  { %v946_v21 = vmul.f32 %v944_v20, %v944_v20 }
 0xb08   :  { %v950_v22 = vsel %vm66_vm0, %v946_v21, 0.0 }
 0xb09   :  { %951 = vadd.xlane.f32.xlu0 %v950_v22 }
 0xb1d   :  { %1095 = vrot.lane.b32.xlu0 %v2535_v50, %s2823_s5 }
 0xb25   :  { %1239 = vrot.lane.b32.xlu0 %v2535_v50, %s2824_s24 }
 0xb45   :  { %v1052_v23 = vpop.f32.mrf.mxu3 }
 0xb46   :  { %v1055_v24 = vmul.f32 0.35355338, %v1052_v23 }
 0xb48   :  { %v1056_v25 = vadd.f32 %v1055_v24, %v2306_v1 }
 0xb4a   :  { %v1057_v26 = vsel %vm168_vm8, %v1056_v25, -inf }
 0xb4b   :  { %1058 = vmax.xlane.f32.xlu1 %v1057_v26 }
 0xb64   :  { %1068 = vrot.lane.b32.xlu1 %v2535_v50, %s2825_s0 }
 0xb7c   :  { %v952_v27 = vpop.xlane.xlu0 %951 }
 0xb7d   :  { %v954_v28 = vmul.f32 %v952_v27, %v2238_v10 }
 0xb7f   :  { %v956_v29 = vadd.f32 1e-05, %v954_v28 }
 0xb81   :  { %2074 = vrsqrt.f32 %v956_v29  ;;  %vm973_vm12 = vweird.f32 %v956_v29 }
 0xb87   :  { %v2075_v30 = vpop.eup %2074 }
 0xb88   :  { %v968_v31 = vmul.f32 %v2075_v30, %v956_v29  ;;  %vm974_vm7 = vweird.f32 %v2075_v30 }
 0xb89   :  { %vm975_vm13 = vmor %vm973_vm12, %vm974_vm7 }
 0xb8a   :  { %v969_v32 = vmul.f32 %v2075_v30, %v968_v31 }
 0xb8c   :  { %v970_v33 = vmul.f32 0.5, %v969_v32 }
 0xb8e   :  { %v971_v34 = vsub.f32 1.5, %v970_v33 }
 0xb8f   :  { %v1096_v43 = vpop.permute.xlu0 %1095 }
 0xb90   :  { %v972_v36 = vmul.f32 %v2075_v30, %v971_v34 }
 0xb92   :  { %v976_v37 = vsel %vm975_vm13, %v2075_v30, %v972_v36 }
 0xb93   :  { %v978_v39 = vmul.f32 %v976_v37, %v944_v20 }
 0xb95   :  { %v983_v40 = vmul.f32 %v2517_v54, %v978_v39 }
 0xb97   :  { %v2567_v42 = vadd.f32 %v2522_v57, %v983_v40  ;;  %v1240_v38 = vpop.permute.xlu0 %1239 }
 0xb99   :  { %1936 = vmatmul.msk.f32.gmra.mxu1 %vm66_vm0, %v2567_v42 }
 0xba1   :  { %1941 = vmatmul.msk.f32.vlgmr.msrb.gmra.mxu1 %vm168_vm8, %v1096_v43 }
 0xba9   :  { %1947 = vmatmul.msk.f32.vlgmr.msra.gmra.mxu1 %vm168_vm8, %v1240_v38 }
 0xbbe   :  { %v1059_v41 = vpop.xlane.xlu1 %1058 }
 0xbbf   :  { %v1060_v47 = vsub.f32 %v1056_v25, %v1059_v41 }
 0xbc1   :  { %v1061_v48 = vmul.f32 1.442695, %v1060_v47 }
 0xbc3   :  { %2076 = vpow2.f32 %v1061_v48 }
 0xbc9   :  { %v2077_v51 = vpop.eup %2076 }
 0xbca   :  { %v1063_v54 = vsel %vm168_vm8, %v2077_v51, 0.0 }
 0xbd6   :  { %v1069_v44 = vpop.permute.xlu1 %1068 }
 0xbd7   :  { %1089 = vmatpush.msrb.mxu0 %v1069_v44 }
 0xbd9   :  { %1943 = vmatpush.xpose.msk.msra.mxu0 %vm168_vm8, %v1170_v61 }
 0xc16   :  { %v1025_v45 = vpop.f32.mrf.mxu1 }
 0xc17   :  { %v2574_v46 = vadd.f32 %v2017_v12, %v1025_v45 }
 0xc19   :  { %1378 = vrot.lane.b32.xlu0 %v2574_v46, %s2823_s5  ;;  %1380 = vrot.lane.b32.xlu2 %v2574_v46, %s2124_s22  ;;  %s2827_s22 = smov 16  }
 0xc1a   :  { %1312 = vrot.lane.b32.xlu1 %v2574_v46, %s2122_s20  ;;  %s2826_s20 = smov 24  }
 0xc1e   :  { %v1120_v49 = vpop.f32.mrf.mxu1 }
 0xc1f   :  { %v1123_v53 = vmul.f32 0.35355338, %v1120_v49 }
 0xc21   :  { %1524 = vrot.lane.b32.xlu2 %v2574_v46, %s2821_s3  ;;  %v1124_v55 = vadd.f32 %v1123_v53, %v2306_v1 }
 0xc22   :  { %1452 = vrot.lane.b32.xlu1 %v2574_v46, %s2820_s21 }
 0xc23   :  { %v1125_v57 = vsel %vm168_vm8, %v1124_v55, -inf }
 0xc26   :  { %v1264_v56 = vpop.f32.mrf.mxu1 }
 0xc27   :  { %v1267_v59 = vmul.f32 0.35355338, %v1264_v56 }
 0xc29   :  { %v1268_v62 = vadd.f32 %v1267_v59, %v2306_v1 }
 0xc2a   :  { %1522 = vrot.lane.b32.xlu1 %v2574_v46, %s2824_s24 }
 0xc2b   :  { %v1269_v63 = vsel %vm168_vm8, %v1268_v62, -inf }
 0xc43   :  { %1064 = vadd.xlane.f32.xlu0 %v1063_v54 }
 0xc4a   :  { %1126 = vmax.xlane.f32.xlu2 %v1125_v57 }
 0xc54   :  { %1270 = vmax.xlane.f32.xlu1 %v1269_v63 }
 0xc57   :  { %1450 = vrot.lane.b32.xlu0 %v2574_v46, %s2822_s23 }
 0xc73   :  { %v1381_v3 = vpop.permute.xlu2 %1380 }
 0xc74   :  { %1952 = vmatpush.xpose.msk.msrb.mxu1 %vm168_vm8, %v1381_v3 }
 0xc7b   :  { %v1525_v4 = vpop.permute.xlu2 %1524 }
 0xc7c   :  { %1958 = vmatpush.xpose.msk.msra.mxu1 %vm168_vm8, %v1525_v4 }
 0xc8b   :  { %v1379_v5 = vpop.permute.xlu0 %1378 }
 0xc8c   :  { %v1313_v6 = vpop.permute.xlu1 %1312  ;;  %1953 = vmatmul.msk.f32.vlgmr.msrb.gmra.mxu1 %vm168_vm8, %v1379_v5 }
 0xc94   :  { %v1453_v7 = vpop.permute.xlu1 %1452 }
 0xc9c   :  { %v1523_v35 = vpop.permute.xlu1 %1522 }
 0xc9d   :  { %1959 = vmatmul.msk.f32.vlgmr.msra.gmra.mxu1 %vm168_vm8, %v1523_v35 }
 0xcb6   :  { %v1065_v8 = vpop.xlane.xlu0 %1064 }
 0xcb7   :  { %2078 = vrcp.f32 %v1065_v8 }
 0xcbd   :  { %v2079_v11 = vpop.eup %2078  ;;  %v1127_v16 = vpop.xlane.xlu2 %1126 }
 0xcbe   :  { %v1067_v12 = vmul.f32 %v2079_v11, %v2077_v51  ;;  %v1128_v61 = vsub.f32 %v1124_v55, %v1127_v16 }
 0xcc0   :  { %1939 = vmatmul.msk.f32.vlgmr.msrb.gmra.mxu0 %vm168_vm8, %v1067_v12  ;;  %v1129_v14 = vmul.f32 1.442695, %v1128_v61 }
 0xcc1   :  { %1949 = vmatpush.xpose.msk.msrb.mxu0 %vm168_vm8, %v1313_v6 }
 0xcc2   :  { %2080 = vpow2.f32 %v1129_v14 }
 0xcc7   :  { %v1271_v21 = vpop.xlane.xlu1 %1270 }
 0xcc8   :  { %1944 = vmatmul.msk.f32.vlgmr.msra.gmra.mxu0 %vm168_vm8, %v1168_v2  ;;  %v1272_v26 = vsub.f32 %v1268_v62, %v1271_v21  ;;  %v2081_v31 = vpop.eup %2080 }
 0xcc9   :  { %1955 = vmatpush.xpose.msk.msra.mxu0 %vm168_vm8, %v1453_v7  ;;  %v1451_v13 = vpop.permute.xlu0 %1450  ;;  %v1131_v33 = vsel %vm168_vm8, %v2081_v31, 0.0 }
 0xcca   :  { %v1273_v29 = vmul.f32 1.442695, %v1272_v26 }
 0xccc   :  { %2082 = vpow2.f32 %v1273_v29 }
 0xcd0   :  { %1950 = vmatmul.msk.f32.vlgmr.msrb.gmra.mxu0 %vm168_vm8, %v2574_v46 }
 0xcd2   :  { %v2083_v34 = vpop.eup %2082 }
 0xcd3   :  { %v1275_v36 = vsel %vm168_vm8, %v2083_v34, 0.0 }
 0xcd8   :  { %1956 = vmatmul.msk.f32.vlgmr.msra.gmra.mxu0 %vm168_vm8, %v1451_v13 }
 0xd09   :  { %v1403_v18 = vpop.f32.mrf.mxu1 }
 0xd0a   :  { %v1406_v52 = vmul.f32 0.35355338, %v1403_v18 }
 0xd0c   :  { %v1407_v23 = vadd.f32 %v1406_v52, %v2366_v9 }
 0xd1a   :  { %v1547_v24 = vpop.f32.mrf.mxu1 }
 0xd1b   :  { %v1550_v27 = vmul.f32 0.35355338, %v1547_v24 }
 0xd1d   :  { %v1551_v30 = vadd.f32 %v1550_v27, %v2366_v9 }
 0xd1f   :  { %v1552_v32 = vsel %vm168_vm8, %v1551_v30, -inf }
 0xd3d   :  { %v1091_v58 = vpop.f32.mrf.mxu0 }
 0xd3e   :  { %1094 = vst.msk [vmem:[#allocation2] sm:$0xff] %vm168_vm8, %v1091_v58 }
 0xd45   :  { %v1192_v15 = vpop.f32.mrf.mxu0 }
 0xd46   :  { %v1195_v17 = vmul.f32 0.35355338, %v1192_v15 }
 0xd48   :  { %v1196_v19 = vadd.f32 %v1195_v17, %v2306_v1  ;;  %v1408_v1 = vsel %vm168_vm8, %v1407_v23, -inf }
 0xd4a   :  { %v1197_v0 = vsel %vm168_vm8, %v1196_v19, -inf }
 0xd4b   :  { %1198 = vmax.xlane.f32.xlu0 %v1197_v0 }
 0xd4d   :  { %v1335_v20 = vpop.f32.mrf.mxu0 }
 0xd4e   :  { %v1338_v22 = vmul.f32 0.35355338, %v1335_v20 }
 0xd50   :  { %v1339_v25 = vadd.f32 %v1338_v22, %v2366_v9 }
 0xd52   :  { %v1340_v28 = vsel %vm168_vm8, %v1339_v25, -inf }
 0xd53   :  { %1341 = vmax.xlane.f32.xlu2 %v1340_v28  ;;  %1409 = vmax.xlane.f32.xlu0 %v1408_v1 }
 0xd55   :  { %v1475_v51 = vpop.f32.mrf.mxu0 }
 0xd56   :  { %v1478_v56 = vmul.f32 0.35355338, %v1475_v51 }
 0xd58   :  { %v1479_v63 = vadd.f32 %v1478_v56, %v2366_v9 }
 0xd5a   :  { %v1480_v5 = vsel %vm168_vm8, %v1479_v63, -inf }
 0xd5b   :  { %1553 = vmax.xlane.f32.xlu2 %v1552_v32  ;;  %1132 = vadd.xlane.f32.xlu0 %v1131_v33 }
 0xd63   :  { %1276 = vadd.xlane.f32.xlu2 %v1275_v36 }
 0xd6f   :  { %1136 = vrot.lane.b32.xlu0 %v2535_v50, %s2129_s27 }
 0xd77   :  { %1280 = vrot.lane.b32.xlu0 %v2535_v50, %s2130_s28 }
 0xd7b   :  { %1208 = vrot.lane.b32.xlu2 %v2535_v50, %s2131_s29 }
 0xd7f   :  { %1351 = vrot.lane.b32.xlu0 %v2574_v46, %s2825_s0 }
 0xd83   :  { %1419 = vrot.lane.b32.xlu2 %v2574_v46, %s2129_s27 }
 0xd87   :  { %1491 = vrot.lane.b32.xlu0 %v2574_v46, %s2131_s29 }
 0xdbe   :  { %v1199_v37 = vpop.xlane.xlu0 %1198 }
 0xdbf   :  { %v1200_v54 = vsub.f32 %v1196_v19, %v1199_v37 }
 0xdc1   :  { %v1201_v59 = vmul.f32 1.442695, %v1200_v54 }
 0xdc6   :  { %v1342_v39 = vpop.xlane.xlu2 %1341  ;;  %v1410_v40 = vpop.xlane.xlu0 %1409 }
 0xdc7   :  { %v1411_v43 = vsub.f32 %v1407_v23, %v1410_v40  ;;  %v1343_v4 = vsub.f32 %v1339_v25, %v1342_v39  ;;  %v1964_v40 = vld [vmem:[%s2785_s6 + $0x38] sm:$0xff] }
 0xdc8   :  { %1624 = vmatpush.msrb.mxu0 %v1964_v40 }
 0xdc9   :  { %v1412_v38 = vmul.f32 1.442695, %v1411_v43  ;;  %v1344_v7 = vmul.f32 1.442695, %v1343_v4  ;;  %v1963_v43 = vld [vmem:[%s2785_s6 + $0x30] sm:$0xff] }
 0xdca   :  { %1625 = vmatpush.msrb.mxu0 %v1963_v43  ;;  %v1977_v43 = vld [vmem:[%s2791_s12 + $0x40] sm:$0xff] }
 0xdcb   :  { %2084 = vpow2.f32 %v1412_v38  ;;  %v1962_v38 = vld [vmem:[%s2785_s6 + $0x28] sm:$0xff] }
 0xdcc   :  { %1626 = vmatpush.msrb.mxu0 %v1962_v38 }
 0xdce   :  { %v1554_v41 = vpop.xlane.xlu2 %1553  ;;  %v1133_v48 = vpop.xlane.xlu0 %1132 }
 0xdcf   :  { %v1555_v44 = vsub.f32 %v1551_v30, %v1554_v41  ;;  %v1961_v41 = vld [vmem:[%s2785_s6 + $0x20] sm:$0xff] }
 0xdd0   :  { %1627 = vmatpush.msrb.mxu0 %v1961_v41 }
 0xdd1   :  { %v1556_v45 = vmul.f32 1.442695, %v1555_v44  ;;  %v2085_v47 = vpop.eup %2084 }
 0xdd2   :  { %v1414_v50 = vsel %vm168_vm8, %v2085_v47, 0.0 }
 0xdd3   :  { %2086 = vpow2.f32 %v1556_v45  ;;  %1415 = vadd.xlane.f32.xlu1 %v1414_v50 }
 0xdd4   :  { %2088 = vrcp.f32 %v1133_v48 }
 0xdd6   :  { %v1277_v49 = vpop.xlane.xlu2 %1276 }
 0xdd7   :  { %2090 = vrcp.f32 %v1277_v49 }
 0xdd8   :  { %2092 = vpow2.f32 %v1201_v59 }
 0xdd9   :  { %v2630_v53 = vpop.eup %2086  ;;  %2094 = vpow2.f32 %v1344_v7 }
 0xdda   :  { %v1558_v55 = vsel %vm168_vm8, %v2630_v53, 0.0  ;;  %v2089_v57 = vpop.eup %2088 }
 0xddb   :  { %1559 = vadd.xlane.f32.xlu1 %v1558_v55  ;;  %v1135_v2 = vmul.f32 %v2089_v57, %v2081_v31 }
 0xddd   :  { %v2091_v6 = vpop.eup %2090 }
 0xdde   :  { %v1209_v62 = vpop.permute.xlu2 %1208  ;;  %v2093_v35 = vpop.eup %2092  ;;  %v1279_v8 = vmul.f32 %v2091_v6, %v2083_v34 }
 0xddf   :  { %1229 = vmatpush.msra.mxu2 %v1209_v62  ;;  %v1203_v9 = vsel %vm168_vm8, %v2093_v35, 0.0  ;;  %v2095_v13 = vpop.eup %2094 }
 0xde0   :  { %v1346_v15 = vsel %vm168_vm8, %v2095_v13, 0.0 }
 0xde1   :  { %v1137_v3 = vpop.permute.xlu0 %1136 }
 0xde2   :  { %1157 = vmatpush.msra.mxu3 %v1137_v3 }
 0xde3   :  { %1942 = vmatmul.msk.f32.vlgmr.msra.gmra.mxu3 %vm168_vm8, %v1135_v2  ;;  %1481 = vmax.xlane.f32.xlu1 %v1480_v5 }
 0xde6   :  { %v1420_v12 = vpop.permute.xlu2 %1419 }
 0xde9   :  { %v1281_v11 = vpop.permute.xlu0 %1280 }
 0xdea   :  { %1301 = vmatpush.msrb.mxu3 %v1281_v11  ;;  %v1972_v11 = vld [vmem:[%s2789_s10 + $0x30] sm:$0xff] }
 0xdeb   :  { %1948 = vmatmul.msk.f32.vlgmr.msrb.gmra.mxu3 %vm168_vm8, %v1279_v8  ;;  %1204 = vadd.xlane.f32.xlu1 %v1203_v9  ;;  %v1973_v8 = vld [vmem:[%s2789_s10 + $0x38] sm:$0xff] }
 0xdec   :  { %1440 = vmatpush.msra.mxu3 %v1420_v12  ;;  %v1971_v12 = vld [vmem:[%s2789_s10 + $0x28] sm:$0xff] }
 0xdf1   :  { %v1352_v58 = vpop.permute.xlu0 %1351 }
 0xdf2   :  { %1372 = vmatpush.msrb.mxu2 %v1352_v58 }
 0xdf3   :  { %1347 = vadd.xlane.f32.xlu1 %v1346_v15 }
 0xdf9   :  { %v1492_v26 = vpop.permute.xlu0 %1491 }
 0xe46   :  { %v1416_v16 = vpop.xlane.xlu1 %1415 }
 0xe47   :  { %2096 = vrcp.f32 %v1416_v16 }
 0xe4d   :  { %v2097_v17 = vpop.eup %2096 }
 0xe4e   :  { %v1418_v18 = vmul.f32 %v2097_v17, %v2085_v47  ;;  %v1560_v19 = vpop.xlane.xlu1 %1559 }
 0xe50   :  { %1954 = vmatmul.msk.f32.vlgmr.msra.gmra.mxu3 %vm168_vm8, %v1418_v18 }
 0xe56   :  { %v1482_v61 = vpop.xlane.xlu1 %1481 }
 0xe57   :  { %v1483_v52 = vsub.f32 %v1479_v63, %v1482_v61 }
 0xe59   :  { %v1484_v0 = vmul.f32 1.442695, %v1483_v52 }
 0xe5b   :  { %2098 = vpow2.f32 %v1484_v0 }
 0xe5e   :  { %v1205_v14 = vpop.xlane.xlu1 %1204 }
 0xe5f   :  { %2100 = vrcp.f32 %v1205_v14 }
 0xe61   :  { %v2099_v20 = vpop.eup %2098 }
 0xe62   :  { %v1486_v21 = vsel %vm168_vm8, %v2099_v20, 0.0 }
 0xe63   :  { %1487 = vadd.xlane.f32.xlu1 %v1486_v21 }
 0xe65   :  { %v2101_v22 = vpop.eup %2100 }
 0xe66   :  { %v1159_v23 = vpop.f32.mrf.mxu3  ;;  %v1207_v24 = vmul.f32 %v2101_v22, %v2093_v35  ;;  %v1348_v25 = vpop.xlane.xlu1 %1347  ;;  %v2019_v22 = vld [vmem:[%s2786_s8 + $0x1] ss:$0 sm:$0xff] }
 0xe67   :  { %1163 = vrot.lane.b32.xlu2 %v1159_v23, %s2132_s30  ;;  %2102 = vrcp.f32 %v1348_v25  ;;  %v2020_v25 = vld [vmem:[%s2787_s9 + $0x1] ss:$0 sm:$0xff] }
 0xe68   :  { %1945 = vmatmul.msk.f32.vlgmr.msra.gmra.mxu2 %vm168_vm8, %v1207_v24 }
 0xe69   :  { %1512 = vmatpush.msra.mxu2 %v1492_v26 }
 0xe6d   :  { %v2103_v27 = vpop.eup %2102 }
 0xe6e   :  { %v1303_v28 = vpop.f32.mrf.mxu3  ;;  %v1350_v1 = vmul.f32 %v2103_v27, %v2095_v13 }
 0xe6f   :  { %1307 = vrot.lane.b32.xlu2 %v1303_v28, %s2826_s20 }
 0xe70   :  { %1951 = vmatmul.msk.f32.vlgmr.msrb.gmra.mxu2 %vm168_vm8, %v1350_v1 }
 0xe71   :  { %1723 = vmatpush.msrb.mxu2 %v1973_v8  ;;  %v2022_v8 = vld [vmem:[%s2790_s13 + $0x1] ss:$0 sm:$0xff] }
 0xe73   :  { %1724 = vmatpush.msrb.mxu2 %v1972_v11 }
 0xe75   :  { %1725 = vmatpush.msrb.mxu2 %v1971_v12 }
 0xe7c   :  { %1563 = vrot.lane.b32.xlu1 %v2574_v46, %s2130_s28 }
 0xec1   :  { %v1164_v29 = vpop.permute.xlu2 %1163 }
 0xec2   :  { %1166 = vst.msk [vmem:[#allocation2] sm:$0xff] %vm305_vm9, %v1164_v29  ;;  %v1984_v29 = vld [vmem:[%s2791_s12 + $0x78] sm:$0xff] }
 0xec3   :  { %1780 = vmatpush.msrb.mxu1 %v1984_v29 }
 0xec9   :  { %v1308_v45 = vpop.permute.xlu2 %1307 }
 0xed3   :  { %v1442_v46 = vpop.f32.mrf.mxu3 }
 0xed6   :  { %v1488_v30 = vpop.xlane.xlu1 %1487 }
 0xed7   :  { %2104 = vrcp.f32 %v1488_v30 }
 0xed8   :  { %2106 = vrcp.f32 %v1560_v19 }
 0xedd   :  { %v2105_v31 = vpop.eup %2104 }
 0xede   :  { %v1490_v32 = vmul.f32 %v2105_v31, %v2099_v20  ;;  %v2107_v33 = vpop.eup %2106  ;;  %v1983_v31 = vld [vmem:[%s2791_s12 + $0x70] sm:$0xff] }
 0xedf   :  { %v1562_v36 = vmul.f32 %v2107_v33, %v2630_v53  ;;  %v2018_v53 = vld [vmem:[%s2784_s7 + $0x1] ss:$0 sm:$0xff]  ;;  %1781 = vmatpush.msrb.mxu1 %v1983_v31 }
 0xee0   :  { %1957 = vmatmul.msk.f32.vlgmr.msra.gmra.mxu2 %vm168_vm8, %v1490_v32  ;;  %v1982_v32 = vld [vmem:[%s2791_s12 + $0x68] sm:$0xff]  ;;  %v1981_v33 = vld [vmem:[%s2791_s12 + $0x60] sm:$0xff] }
 0xee1   :  { %1782 = vmatpush.msrb.mxu1 %v1982_v32 }
 0xee3   :  { %1783 = vmatpush.msrb.mxu1 %v1981_v33 }
 0xeeb   :  { %v1231_v34 = vpop.f32.mrf.mxu2 }
 0xeec   :  { %1235 = vrot.lane.b32.xlu0 %v1231_v34, %s2827_s22  ;;  %v1980_v34 = vld [vmem:[%s2791_s12 + $0x58] sm:$0xff] }
 0xeed   :  { %1784 = vmatpush.msrb.mxu1 %v1980_v34 }
 0xeee   :  { %v1564_v37 = vpop.permute.xlu1 %1563 }
 0xeef   :  { %1584 = vmatpush.msrb.mxu3 %v1564_v37 }
 0xef0   :  { %1960 = vmatmul.msk.f32.vlgmr.msrb.gmra.mxu3 %vm168_vm8, %v1562_v36  ;;  %v1979_v36 = vld [vmem:[%s2791_s12 + $0x50] sm:$0xff] }
 0xef1   :  { %1785 = vmatpush.msrb.mxu1 %v1979_v36 }
 0xef3   :  { %v1374_v39 = vpop.f32.mrf.mxu2 }
 0xef4   :  { %1377 = vst.msk [vmem:[#allocation2 + $0x8] sm:$0xff] %vm168_vm8, %v1374_v39  ;;  %1446 = vrot.lane.b32.xlu0 %v1442_v46, %s2132_s30  ;;  %v1978_v39 = vld [vmem:[%s2791_s12 + $0x48] sm:$0xff] }
 0xef5   :  { %1786 = vmatpush.msrb.mxu1 %v1978_v39 }
 0xef7   :  { %1787 = vmatpush.msrb.mxu1 %v1977_v43  ;;  %v2023_v43 = vld [vmem:[%s2792_s14 + $0x1] ss:$0 sm:$0xff] }
 0xf5e   :  { %v1236_v44 = vpop.permute.xlu0 %1235 }
 0xf5f   :  { %1238 = vst.msk [vmem:[#allocation2] sm:$0xff] %vm378_vm10, %v1236_v44 }
 0xf60   :  { %1310 = vst.msk [vmem:[#allocation2] sm:$0xff] %vm451_vm11, %v1308_v45 }
 0xf63   :  { %v1514_v47 = vpop.f32.mrf.mxu2 }
 0xf64   :  { %1518 = vrot.lane.b32.xlu2 %v1514_v47, %s2827_s22  ;;  %v2021_v47 = vld [vmem:[%s2788_s11 + $0x1] ss:$0 sm:$0xff] }
 0xf66   :  { %v1447_v50 = vpop.permute.xlu0 %1446 }
 0xf67   :  { %1449 = vst.msk [vmem:[#allocation2 + $0x8] sm:$0xff] %vm305_vm9, %v1447_v50  ;;  %v1594_v48 = vld [vmem:[#allocation2] sm:$0xff] }
 0xf68   :  { %1966 = vmatmul.msk.f32.vlgmr.msrb.gmra.mxu0 %vm66_vm0, %v1594_v48 }
 0xf73   :  { %v1586_v49 = vpop.f32.mrf.mxu3 }
 0xf74   :  { %1590 = vrot.lane.b32.xlu0 %v1586_v49, %s2826_s20 }
 0xfbe   :  { %v1519_v51 = vpop.permute.xlu2 %1518 }
 0xfbf   :  { %1521 = vst.msk [vmem:[#allocation2 + $0x8] sm:$0xff] %vm378_vm10, %v1519_v51 }
 0xfe5   :  { %v1629_v54 = vpop.f32.mrf.mxu0 }
 0xfe6   :  { %v1630_v55 = vadd.f32 %v2018_v53, %v1629_v54  ;;  %v1591_v56 = vpop.permute.xlu0 %1590 }
 0xfe7   :  { %1593 = vst.msk [vmem:[#allocation2 + $0x8] sm:$0xff] %vm451_vm11, %v1591_v56 }
 0xfe8   :  { %v1635_v57 = vadd.f32 %v1630_v55, %v2526_v60 }
 0xfea   :  { %v1641_v59 = vsel %vm66_vm0, %v1635_v57, 0.0 }
 0xfeb   :  { %1642 = vadd.xlane.f32.xlu1 %v1641_v59 }
 0xfee   :  { %v1595_v62 = vld [vmem:[#allocation2 + $0x8] sm:$0xff] }
 0xfef   :  { %1967 = vmatmul.msk.f32.gmra.mxu0 %vm66_vm0, %v1595_v62 }
0x105e   :  { %v1643_v63 = vpop.xlane.xlu1 %1642 }
0x105f   :  { %v1647_v2 = vmul.f32 %v1643_v63, %v2238_v10 }
0x1061   :  { %v1649_v3 = vsub.f32 %v1635_v57, %v1647_v2 }
0x1063   :  { %v1651_v4 = vmul.f32 %v1649_v3, %v1649_v3 }
0x1065   :  { %v1653_v5 = vsel %vm66_vm0, %v1651_v4, 0.0 }
0x1066   :  { %1654 = vadd.xlane.f32.xlu0 %v1653_v5 }
0x106c   :  { %v1632_v6 = vpop.f32.mrf.mxu0 }
0x106d   :  { %v1633_v7 = vadd.f32 %v2018_v53, %v1632_v6 }
0x106f   :  { %v1636_v35 = vadd.f32 %v1633_v7, %v2567_v42  ;;  %v1970_v42 = vld [vmem:[%s2789_s10 + $0x20] sm:$0xff] }
0x1070   :  { %1726 = vmatpush.msrb.mxu2 %v1970_v42 }
0x1071   :  { %v1644_v60 = vsel %vm66_vm0, %v1636_v35, 0.0 }
0x1072   :  { %1645 = vadd.xlane.f32.xlu2 %v1644_v60 }
0x10d9   :  { %v1655_v9 = vpop.xlane.xlu0 %1654 }
0x10da   :  { %v1659_v13 = vmul.f32 %v1655_v9, %v2238_v10 }
0x10dc   :  { %v1661_v58 = vadd.f32 1e-05, %v1659_v13 }
0x10de   :  { %2108 = vrsqrt.f32 %v1661_v58  ;;  %vm1669_vm9 = vweird.f32 %v1661_v58 }
0x10e4   :  { %v2109_v15 = vpop.eup %2108 }
0x10e5   :  { %v1664_v16 = vmul.f32 %v2109_v15, %v1661_v58  ;;  %v1646_v17 = vpop.xlane.xlu2 %1645  ;;  %vm1670_vm8 = vweird.f32 %v2109_v15 }
0x10e6   :  { %v1648_v18 = vmul.f32 %v1646_v17, %v2238_v10  ;;  %vm1671_vm10 = vmor %vm1669_vm9, %vm1670_vm8 }
0x10e7   :  { %v1665_v19 = vmul.f32 %v2109_v15, %v1664_v16 }
0x10e8   :  { %v1650_v61 = vsub.f32 %v1636_v35, %v1648_v18 }
0x10e9   :  { %v1666_v52 = vmul.f32 0.5, %v1665_v19 }
0x10ea   :  { %v1652_v0 = vmul.f32 %v1650_v61, %v1650_v61 }
0x10eb   :  { %v1667_v14 = vsub.f32 1.5, %v1666_v52 }
0x10ec   :  { %v1656_v20 = vsel %vm66_vm0, %v1652_v0, 0.0 }
0x10ed   :  { %v1668_v21 = vmul.f32 %v2109_v15, %v1667_v14  ;;  %1657 = vadd.xlane.f32.xlu2 %v1656_v20 }
0x10ef   :  { %v1672_v23 = vsel %vm1671_vm10, %v2109_v15, %v1668_v21 }
0x10f0   :  { %v1683_v24 = vmul.f32 %v1672_v23, %v1649_v3  ;;  %v1858_v23 = vld [vmem:[%s2794_s16 + $0x18] sm:$0xff] }
0x10f1   :  { %1881 = vmatpush.msra.mxu3 %v1858_v23 }
0x10f2   :  { %v1688_v26 = vmul.f32 %v2019_v22, %v1683_v24  ;;  %v1857_v24 = vld [vmem:[%s2794_s16 + $0x10] sm:$0xff] }
0x10f3   :  { %1882 = vmatpush.msra.mxu3 %v1857_v24 }
0x10f4   :  { %v1693_v27 = vadd.f32 %v2020_v25, %v1688_v26  ;;  %v1855_v26 = vld [vmem:[%s2794_s16] sm:$0xff] }
0x10f6   :  { %1975 = vmatmul.msk.f32.vlgmr.msrb.gmra.mxu2 %vm66_vm0, %v1693_v27 }
0x1160   :  { %v1658_v28 = vpop.xlane.xlu2 %1657 }
0x1161   :  { %v1660_v1 = vmul.f32 %v1658_v28, %v2238_v10 }
0x1163   :  { %v1662_v30 = vadd.f32 1e-05, %v1660_v1 }
0x1165   :  { %2110 = vrsqrt.f32 %v1662_v30  ;;  %vm1679_vm14 = vweird.f32 %v1662_v30 }
0x116b   :  { %v2111_v37 = vpop.eup %2110 }
0x116c   :  { %v1674_v46 = vmul.f32 %v2111_v37, %v1662_v30  ;;  %vm1680_vm11 = vweird.f32 %v2111_v37 }
0x116d   :  { %vm1681_vm1 = vmor %vm1679_vm14, %vm1680_vm11 }
0x116e   :  { %v1675_v40 = vmul.f32 %v2111_v37, %v1674_v46 }
0x1170   :  { %v1676_v38 = vmul.f32 0.5, %v1675_v40 }
0x1172   :  { %v1677_v41 = vsub.f32 1.5, %v1676_v38 }
0x1174   :  { %v1678_v44 = vmul.f32 %v2111_v37, %v1677_v41 }
0x1176   :  { %v1682_v45 = vsel %vm1681_vm1, %v2111_v37, %v1678_v44  ;;  %v2024_v44 = vld [vmem:[%s2793_s15 + $0x1] ss:$0 sm:$0xff] }
0x1177   :  { %v1684_v50 = vmul.f32 %v1682_v45, %v1650_v61 }
0x1179   :  { %v1728_v48 = vpop.f32.mrf.mxu2  ;;  %v1689_v49 = vmul.f32 %v2019_v22, %v1684_v50 }
0x117a   :  { %v1729_v51 = vadd.f32 %v2021_v47, %v1728_v48 }
0x117b   :  { %v1694_v53 = vadd.f32 %v2020_v25, %v1689_v49  ;;  %v1856_v25 = vld [vmem:[%s2794_s16 + $0x8] sm:$0xff] }
0x117c   :  { %v1736_v54 = vmul.f32 0.044715, %v1729_v51  ;;  %v1734_v63 = vmul.f32 0.5, %v1729_v51  ;;  %1883 = vmatpush.msra.mxu3 %v1856_v25 }
0x117d   :  { %1976 = vmatmul.msk.f32.gmra.mxu2 %vm66_vm0, %v1694_v53 }
0x117e   :  { %v1738_v55 = vmul.f32 %v1736_v54, %v1729_v51  ;;  %1884 = vmatpush.msra.mxu3 %v1855_v26 }
0x1180   :  { %v1740_v56 = vmul.f32 %v1738_v55, %v1729_v51 }
0x1182   :  { %v1742_v57 = vadd.f32 %v1740_v56, %v1729_v51 }
0x1184   :  { %v1744_v59 = vmul.f32 0.7978846, %v1742_v57 }
0x1186   :  { %2112 = vtanh.f32 %v1744_v59 }
0x118c   :  { %v2113_v62 = vpop.eup %2112 }
0x118d   :  { %v1748_v2 = vadd.f32 1.0, %v2113_v62  ;;  %v2025_v62 = vld [vmem:[%s2795_s17] ss:$0 sm:$0xff] }
0x118f   :  { %v1750_v3 = vmul.f32 %v1748_v2, %v1734_v63 }
0x1191   :  { %1986 = vmatmul.msk.f32.vlgmr.msrb.gmra.mxu1 %vm901_vm15, %v1750_v3 }
0x1200   :  { %v1731_v4 = vpop.f32.mrf.mxu2 }
0x1201   :  { %v1732_v5 = vadd.f32 %v2021_v47, %v1731_v4 }
0x1203   :  { %v1737_v6 = vmul.f32 0.044715, %v1732_v5  ;;  %v1735_v15 = vmul.f32 0.5, %v1732_v5 }
0x1205   :  { %v1739_v7 = vmul.f32 %v1737_v6, %v1732_v5 }
0x1207   :  { %v1741_v35 = vmul.f32 %v1739_v7, %v1732_v5 }
0x1209   :  { %v1743_v60 = vadd.f32 %v1741_v35, %v1732_v5 }
0x120b   :  { %v1745_v11 = vmul.f32 0.7978846, %v1743_v60 }
0x120d   :  { %2114 = vtanh.f32 %v1745_v11 }
0x120e   :  { %v1789_v12 = vpop.f32.mrf.mxu1 }
0x120f   :  { %v1790_v42 = vadd.f32 %v2022_v8, %v1789_v12 }
0x1211   :  { %v1795_v9 = vadd.f32 %v1790_v42, %v1693_v27 }
0x1213   :  { %v2115_v13 = vpop.eup %2114  ;;  %v1801_v58 = vsel %vm66_vm0, %v1795_v9, 0.0 }
0x1214   :  { %1802 = vadd.xlane.f32.xlu1 %v1801_v58  ;;  %v1749_v16 = vadd.f32 1.0, %v2115_v13 }
0x1216   :  { %v1751_v17 = vmul.f32 %v1749_v16, %v1735_v15 }
0x1218   :  { %1987 = vmatmul.msk.f32.gmra.mxu1 %vm901_vm15, %v1751_v17 }
0x1287   :  { %v1803_v18 = vpop.xlane.xlu1 %1802 }
0x1288   :  { %v1807_v19 = vmul.f32 %v1803_v18, %v2238_v10 }
0x128a   :  { %v1809_v61 = vsub.f32 %v1795_v9, %v1807_v19 }
0x128c   :  { %v1811_v52 = vmul.f32 %v1809_v61, %v1809_v61 }
0x128e   :  { %v1813_v0 = vsel %vm66_vm0, %v1811_v52, 0.0 }
0x128f   :  { %1814 = vadd.xlane.f32.xlu2 %v1813_v0 }
0x1295   :  { %v1792_v14 = vpop.f32.mrf.mxu1 }
0x1296   :  { %v1793_v20 = vadd.f32 %v2022_v8, %v1792_v14 }
0x1298   :  { %v1796_v21 = vadd.f32 %v1793_v20, %v1694_v53 }
0x129a   :  { %v1804_v22 = vsel %vm66_vm0, %v1796_v21, 0.0 }
0x129b   :  { %1805 = vadd.xlane.f32.xlu0 %v1804_v22 }
0x1302   :  { %v1815_v27 = vpop.xlane.xlu2 %1814 }
0x1303   :  { %v1819_v28 = vmul.f32 %v1815_v27, %v2238_v10 }
0x1305   :  { %v1821_v1 = vadd.f32 1e-05, %v1819_v28 }
0x1307   :  { %2116 = vrsqrt.f32 %v1821_v1  ;;  %vm1829_vm2 = vweird.f32 %v1821_v1 }
0x130d   :  { %v2117_v29 = vpop.eup %2116 }
0x130e   :  { %v1824_v30 = vmul.f32 %v2117_v29, %v1821_v1  ;;  %v1806_v31 = vpop.xlane.xlu0 %1805  ;;  %vm1830_vm15 = vweird.f32 %v2117_v29 }
0x130f   :  { %v1808_v32 = vmul.f32 %v1806_v31, %v2238_v10  ;;  %vm1831_vm3 = vmor %vm1829_vm2, %vm1830_vm15 }
0x1310   :  { %v1825_v33 = vmul.f32 %v2117_v29, %v1824_v30 }
0x1311   :  { %v1810_v34 = vsub.f32 %v1796_v21, %v1808_v32 }
0x1312   :  { %v1826_v36 = vmul.f32 0.5, %v1825_v33 }
0x1313   :  { %v1812_v37 = vmul.f32 %v1810_v34, %v1810_v34 }
0x1314   :  { %v1827_v46 = vsub.f32 1.5, %v1826_v36 }
0x1315   :  { %v1816_v39 = vsel %vm66_vm0, %v1812_v37, 0.0 }
0x1316   :  { %v1828_v40 = vmul.f32 %v2117_v29, %v1827_v46  ;;  %1817 = vadd.xlane.f32.xlu1 %v1816_v39 }
0x1318   :  { %v1832_v38 = vsel %vm1831_vm3, %v2117_v29, %v1828_v40 }
0x1319   :  { %v1843_v41 = vmul.f32 %v1832_v38, %v1809_v61 }
0x131b   :  { %v1848_v45 = vmul.f32 %v2023_v43, %v1843_v41 }
0x131d   :  { %v1853_v47 = vadd.f32 %v2024_v44, %v1848_v45 }
0x131f   :  { %1990 = vmatmul.msk.f32.vlgmr.msra.gmra.mxu3 %vm66_vm0, %v1853_v47 }
0x1389   :  { %v1818_v50 = vpop.xlane.xlu1 %1817 }
0x138a   :  { %v1820_v48 = vmul.f32 %v1818_v50, %v2238_v10 }
0x138c   :  { %v1822_v49 = vadd.f32 1e-05, %v1820_v48 }
0x138e   :  { %2118 = vrsqrt.f32 %v1822_v49  ;;  %vm1839_vm5 = vweird.f32 %v1822_v49 }
0x1394   :  { %v2119_v51 = vpop.eup %2118 }
0x1395   :  { %v1834_v53 = vmul.f32 %v2119_v51, %v1822_v49  ;;  %vm1840_vm4 = vweird.f32 %v2119_v51 }
0x1396   :  { %vm1841_vm6 = vmor %vm1839_vm5, %vm1840_vm4 }
0x1397   :  { %v1835_v54 = vmul.f32 %v2119_v51, %v1834_v53 }
0x1399   :  { %v1836_v55 = vmul.f32 0.5, %v1835_v54 }
0x139b   :  { %v1837_v56 = vsub.f32 1.5, %v1836_v55 }
0x139d   :  { %v1838_v57 = vmul.f32 %v2119_v51, %v1837_v56 }
0x139f   :  { %v1842_v59 = vsel %vm1841_vm6, %v2119_v51, %v1838_v57 }
0x13a0   :  { %v1844_v63 = vmul.f32 %v1842_v59, %v1810_v34 }
0x13a2   :  { %v1886_v2 = vpop.f32.mrf.mxu3  ;;  %v1849_v3 = vmul.f32 %v2023_v43, %v1844_v63 }
0x13a3   :  { %v1887_v10 = vadd.f32 %v2025_v62, %v1886_v2 }
0x13a4   :  { %v1854_v4 = vadd.f32 %v2024_v44, %v1849_v3 }
0x13a5   :  { %1892 = vst [vmem:[%s2796_s18] sm:$0xff] %v1887_v10 }
0x13a6   :  { %1991 = vmatmul.msk.f32.gmra.mxu3 %vm66_vm0, %v1854_v4 }
0x1429   :  { %v1889_v5 = vpop.f32.mrf.mxu3 }
0x142a   :  { %v1890_v6 = vadd.f32 %v2025_v62, %v1889_v5 }
0x142c   :  { %1893 = vst [vmem:[%s2796_s18 + $0x8] sm:$0xff] %v1890_v6 }

</bundles_post_ra>
